<compile_context>
chip_gen: v6e
topology: v6e:2x2x1
jax: 0.10.0
libtpu: 0.0.40
codegen_flags: <defaults>
</compile_context>

<pallas_src>
import functools

import jax
import jax.numpy as jnp
from jax.experimental import pallas as pl
from jax.experimental.pallas import tpu as pltpu

LANE = 128


def _round_up(x, m):
    return (x + m - 1) // m * m


# ----------------------------- Pallas kernels ------------------------------

def _matmul_bias_kernel(a_ref, b_ref, bias_ref, o_ref, *, relu):
    # bf16 operands, f32 accumulation on the MXU; bias/output in f32.
    acc = jnp.dot(a_ref[...], b_ref[...], preferred_element_type=jnp.float32)
    acc = acc + bias_ref[...]
    if relu:
        acc = jnp.maximum(acc, 0.0)
    o_ref[...] = acc.astype(o_ref.dtype)


def matmul_bias(a, b, bias, *, relu=False, tm=512):
    """out = (relu?)(a @ b + bias); a:(M,K), b:(K,N), bias:(N,). N % 128 == 0.

    Tiled over M with a parallel grid; b/bias resident in VMEM; a/b cast to
    bf16 for the MXU, f32 accumulation.  tm=512 targets v5e/v6e headroom and
    still comfortably fits v7x's 64 MiB VMEM at these K/N sizes.
    """
    M, K = a.shape
    K2, N = b.shape
    assert K == K2 and N % LANE == 0
    Mp = _round_up(M, 8)
    tmm = min(tm, Mp)
    Mp = _round_up(Mp, tmm)
    if Mp != M:
        a = jnp.pad(a, ((0, Mp - M), (0, 0)))
    a = a.astype(jnp.bfloat16)
    b = b.astype(jnp.bfloat16)
    bias2 = bias.reshape(1, N).astype(jnp.float32)

    out = pl.pallas_call(
        functools.partial(_matmul_bias_kernel, relu=relu),
        out_shape=jax.ShapeDtypeStruct((Mp, N), jnp.float32),
        grid=(Mp // tmm,),
        in_specs=[
            pl.BlockSpec((tmm, K), lambda i: (i, 0)),
            pl.BlockSpec((K, N), lambda i: (0, 0)),     # resident weight
            pl.BlockSpec((1, N), lambda i: (0, 0)),     # resident bias
        ],
        out_specs=pl.BlockSpec((tmm, N), lambda i: (i, 0)),
        compiler_params=pltpu.CompilerParams(
            dimension_semantics=("parallel",)),
    )(a, b, bias2)
    return out[:M]


def _max4_relu_kernel(a_ref, b_ref, c_ref, d_ref, o_ref):
    m = jnp.maximum(jnp.maximum(a_ref[...], b_ref[...]),
                    jnp.maximum(c_ref[...], d_ref[...]))
    o_ref[...] = jnp.maximum(m, 0.0)


def maxpool2x2_relu_nhwc(x, *, tm=512):
    """relu(max_pool2d(x, 2)) for NHWC x with even H, W and C % 128 == 0."""
    B, H, W, C = x.shape
    assert C % LANE == 0 and H % 2 == 0 and W % 2 == 0
    Hp, Wp = H // 2, W // 2
    M = B * Hp * Wp
    # Four strided window views (JAX glue; channels stay on the lane axis).
    views = [x[:, r::2, s::2, :].reshape(M, C)
             for r in range(2) for s in range(2)]

    Mp = _round_up(M, 8)
    tmm = min(tm, Mp)
    Mp = _round_up(Mp, tmm)
    if Mp != M:
        views = [jnp.pad(v, ((0, Mp - M), (0, 0))) for v in views]

    out = pl.pallas_call(
        _max4_relu_kernel,
        out_shape=jax.ShapeDtypeStruct((Mp, C), jnp.float32),
        grid=(Mp // tmm,),
        in_specs=[pl.BlockSpec((tmm, C), lambda i: (i, 0))] * 4,
        out_specs=pl.BlockSpec((tmm, C), lambda i: (i, 0)),
        compiler_params=pltpu.CompilerParams(
            dimension_semantics=("parallel",)),
    )(*views)
    return out[:M].reshape(B, Hp, Wp, C)


def _fc_tail_kernel(x_ref, w1_ref, b1_ref, w2_ref, b2_ref, o_ref, *, nclasses):
    # fc1 + relu
    h = jnp.dot(x_ref[...], w1_ref[...], preferred_element_type=jnp.float32)
    h = jnp.maximum(h + b1_ref[...], 0.0)
    # fc2
    logits = jnp.dot(h.astype(jnp.bfloat16), w2_ref[...],
                     preferred_element_type=jnp.float32) + b2_ref[...]
    # log_softmax over the real classes only (padded columns masked out so
    # they do not perturb the normalizer).
    col = jax.lax.broadcasted_iota(jnp.int32, logits.shape, 1)
    valid = col < nclasses
    z = jnp.where(valid, logits, -jnp.inf)
    m = jnp.max(z, axis=-1, keepdims=True)
    e = jnp.where(valid, jnp.exp(z - m), 0.0)
    lse = jnp.log(jnp.sum(e, axis=-1, keepdims=True))
    o_ref[...] = jnp.where(valid, z - m - lse, 0.0)


def fc_tail(x, fc1_w_hwc, fc1_b, fc2_w, fc2_b, *, tm=256):
    """Fused fc1(+relu) -> fc2 -> log_softmax.  x:(B,320); weights PyTorch
    (out,in) layout with fc1 columns already permuted to HWC flatten order."""
    B, K1 = x.shape
    nclasses = fc2_w.shape[0]
    H1 = _round_up(fc1_w_hwc.shape[0], LANE)          # 50 -> 128
    Np = _round_up(nclasses, LANE)                    # 10 -> 128

    w1 = jnp.pad(fc1_w_hwc.T, ((0, 0), (0, H1 - fc1_w_hwc.shape[0])))
    b1 = jnp.pad(fc1_b, (0, H1 - fc1_b.shape[0])).reshape(1, H1)
    w2 = jnp.pad(fc2_w.T, ((0, H1 - fc2_w.shape[1]), (0, Np - nclasses)))
    b2 = jnp.pad(fc2_b, (0, Np - nclasses)).reshape(1, Np)

    Bp = _round_up(B, 8)
    tb = min(tm, Bp)
    Bp = _round_up(Bp, tb)
    x_p = jnp.pad(x, ((0, Bp - B), (0, 0))).astype(jnp.bfloat16)

    out = pl.pallas_call(
        functools.partial(_fc_tail_kernel, nclasses=nclasses),
        out_shape=jax.ShapeDtypeStruct((Bp, Np), jnp.float32),
        grid=(Bp // tb,),
        in_specs=[
            pl.BlockSpec((tb, K1), lambda i: (i, 0)),
            pl.BlockSpec((K1, H1), lambda i: (0, 0)),
            pl.BlockSpec((1, H1), lambda i: (0, 0)),
            pl.BlockSpec((H1, Np), lambda i: (0, 0)),
            pl.BlockSpec((1, Np), lambda i: (0, 0)),
        ],
        out_specs=pl.BlockSpec((tb, Np), lambda i: (i, 0)),
        compiler_params=pltpu.CompilerParams(
            dimension_semantics=("parallel",)),
    )(x_p, w1.astype(jnp.bfloat16), b1.astype(jnp.float32),
      w2.astype(jnp.bfloat16), b2.astype(jnp.float32))
    return out[:B, :nclasses]


# ------------------------------ conv (im2col) -------------------------------

def conv2d_bias_nhwc(x, w_oihw, b, *, tm=512):
    """VALID conv, stride 1.  x:(B,H,W,Cin) NHWC; w:(Cout,Cin,k,k); b:(Cout,).
    Returns (B,Ho,Wo,Cout_pad128) with zero-padded channels."""
    B, H, W, Cin = x.shape
    Cout, Cin2, k, _ = w_oihw.shape
    assert Cin == Cin2
    Ho, Wo = H - k + 1, W - k + 1

    # im2col via channel-last slices + concat (no big transposes);
    # K ordering is (kh, kw, cin).
    # TODO(synk): move patch extraction fully inside the kernel (k*k shifted
    # reads from a VMEM-resident NHWC tile) to drop the HBM im2col blow-up.
    cols = [x[:, di:di + Ho, dj:dj + Wo, :]
            for di in range(k) for dj in range(k)]
    K = k * k * Cin
    Kp = _round_up(K, LANE)
    patches = jnp.concatenate(cols, axis=-1).reshape(B * Ho * Wo, K)
    if Kp != K:
        patches = jnp.pad(patches, ((0, 0), (0, Kp - K)))

    Np = _round_up(Cout, LANE)
    w_mat = jnp.transpose(w_oihw, (2, 3, 1, 0)).reshape(K, Cout)  # (kh,kw,ci)
    w_mat = jnp.pad(w_mat, ((0, Kp - K), (0, Np - Cout)))
    b_pad = jnp.pad(b, (0, Np - Cout))

    out = matmul_bias(patches, w_mat, b_pad, relu=False, tm=tm)  # (M, Np)
    return out.reshape(B, Ho, Wo, Np)


# --------------------------- model definition ------------------------------

def init_params(num_classes=10):
    key = jax.random.PRNGKey(42)
    ks = jax.random.split(key, 8)
    p = {}
    p["conv1_w"] = 0.10 * jax.random.normal(ks[0], (10, 1, 5, 5), jnp.float32)
    p["conv1_b"] = 0.10 * jax.random.normal(ks[1], (10,), jnp.float32)
    p["conv2_w"] = 0.05 * jax.random.normal(ks[2], (20, 10, 5, 5), jnp.float32)
    p["conv2_b"] = 0.05 * jax.random.normal(ks[3], (20,), jnp.float32)
    p["fc1_w"] = 0.05 * jax.random.normal(ks[4], (50, 320), jnp.float32)
    p["fc1_b"] = 0.05 * jax.random.normal(ks[5], (50,), jnp.float32)
    p["fc2_w"] = 0.10 * jax.random.normal(ks[6], (num_classes, 50), jnp.float32)
    p["fc2_b"] = 0.10 * jax.random.normal(ks[7], (num_classes,), jnp.float32)
    return p


def custom_model_forward(params, x_nchw):
    # Inference mode: Dropout2d and F.dropout(training=False) are identities.
    # TODO(synk): dropout omitted (eval-mode identity).
    B = x_nchw.shape[0]
    x = jnp.transpose(x_nchw, (0, 2, 3, 1))                   # NCHW -> NHWC once

    y = conv2d_bias_nhwc(x, params["conv1_w"], params["conv1_b"])  # (B,24,24,128)
    y = maxpool2x2_relu_nhwc(y)                                    # (B,12,12,128)
    y = y[..., :params["conv1_w"].shape[0]]                        # drop chan pad

    y = conv2d_bias_nhwc(y, params["conv2_w"], params["conv2_b"])  # (B,8,8,128)
    y = maxpool2x2_relu_nhwc(y)                                    # (B,4,4,128)
    c2 = params["conv2_w"].shape[0]
    y = y[..., :c2].reshape(B, 4 * 4 * c2)                         # HWC flatten

    # Permute fc1 columns from PyTorch's CHW flatten order to our HWC order.
    fc1_w_hwc = (params["fc1_w"].reshape(-1, c2, 4, 4)
                 .transpose(0, 2, 3, 1).reshape(-1, 4 * 4 * c2))
    return fc_tail(y, fc1_w_hwc, params["fc1_b"],
                   params["fc2_w"], params["fc2_b"])


def reference_forward(params, x):
    """Pure-JAX/XLA reference (mirrors the PyTorch module) for cross-check."""
    def conv(x, w, b):
        y = jax.lax.conv_general_dilated(
            x, w, (1, 1), "VALID",
            dimension_numbers=("NCHW", "OIHW", "NCHW"))
        return y + b.reshape(1, -1, 1, 1)

    def pool(x):
        return jax.lax.reduce_window(
            x, -jnp.inf, jax.lax.max, (1, 1, 2, 2), (1, 1, 2, 2), "VALID")

    x = jax.nn.relu(pool(conv(x, params["conv1_w"], params["conv1_b"])))
    x = jax.nn.relu(pool(conv(x, params["conv2_w"], params["conv2_b"])))
    x = x.reshape(x.shape[0], -1)
    x = jax.nn.relu(x @ params["fc1_w"].T + params["fc1_b"])
    x = x @ params["fc2_w"].T + params["fc2_b"]
    return jax.nn.log_softmax(x, axis=1)


if __name__ == "__main__":
    params = init_params(num_classes=10)
    x = jax.random.normal(jax.random.PRNGKey(0), (2, 1, 28, 28), jnp.float32)

    fwd = jax.jit(custom_model_forward)
    out = jax.block_until_ready(fwd(params, x))
    assert out.shape == (2, 10), out.shape

    ref = reference_forward(params, x)
    err = float(jnp.max(jnp.abs(out - ref)))
    # bf16 MXU operands with f32 accumulation: loosened tolerance vs f32 ref.
    assert err < 5e-2, f"mismatch vs reference: max abs err = {err}"

    print("KERNEL_OK")
</pallas_src>

<mosaic_0001>
module attributes {stable_mosaic.version = 11 : i64} {
  func.func @_matmul_bias_kernel(%arg0: i32, %arg1: memref<512x128xbf16, #tpu.memory_space<vmem>>, %arg2: memref<128x128xbf16, #tpu.memory_space<vmem>>, %arg3: memref<1x128xf32, #tpu.memory_space<vmem>>, %arg4: memref<512x128xf32, #tpu.memory_space<vmem>>) attributes {dimension_semantics = [#tpu.dimension_semantics<parallel>], iteration_bounds = array<i64: 3>, scalar_prefetch = 0 : i64, scratch_operands = 0 : i64, tpu.core_type = #tpu.core_type<tc>, window_params = [{transform_indices = @transform_0, window_bounds = array<i64: 512, 128>}, {pipeline_mode = #tpu.pipeline_mode<synchronous>, transform_indices = @transform_1, window_bounds = array<i64: 128, 128>}, {pipeline_mode = #tpu.pipeline_mode<synchronous>, transform_indices = @transform_2, window_bounds = array<i64: 1, 128>}, {transform_indices = @transform_3, window_bounds = array<i64: 512, 128>}]} {
    %c0 = arith.constant 0 : index
    %c0_0 = arith.constant 0 : index
    %0 = vector.load %arg1[%c0, %c0_0] : memref<512x128xbf16, #tpu.memory_space<vmem>>, vector<512x128xbf16>
    %c0_1 = arith.constant 0 : index
    %c0_2 = arith.constant 0 : index
    %1 = vector.load %arg2[%c0_1, %c0_2] : memref<128x128xbf16, #tpu.memory_space<vmem>>, vector<128x128xbf16>
    %cst = arith.constant dense<0.000000e+00> : vector<512x128xf32>
    %2 = tpu.matmul %0, %1, %cst {dimension_numbers = #tpu.dot_dimension_numbers<[1], [0], [0], [1], [0, 0, 1, 1], [], []>} : vector<512x128xbf16>, vector<128x128xbf16>, vector<512x128xf32> -> vector<512x128xf32>
    %c0_3 = arith.constant 0 : index
    %c0_4 = arith.constant 0 : index
    %3 = vector.load %arg3[%c0_3, %c0_4] : memref<1x128xf32, #tpu.memory_space<vmem>>, vector<1x128xf32>
    %4 = vector.broadcast %3 : vector<1x128xf32> to vector<512x128xf32>
    %5 = arith.addf %2, %4 : vector<512x128xf32>
    %c0_5 = arith.constant 0 : index
    %c0_6 = arith.constant 0 : index
    %6 = vector.load %arg4[%c0_5, %c0_6] : memref<512x128xf32, #tpu.memory_space<vmem>>, vector<512x128xf32>
    tpu.vector_store %arg4[%c0_5, %c0_6], %5 {strides = array<i32>} : memref<512x128xf32, #tpu.memory_space<vmem>>, vector<512x128xf32>,
    return
  }
  func.func @transform_0(%arg0: i32) -> (i32, i32) {
    %c0_i32 = arith.constant 0 : i32
    %c0_i32_0 = arith.constant 0 : i32
    return %arg0, %c0_i32 : i32, i32
  }
  func.func @transform_1(%arg0: i32) -> (i32, i32) {
    %c0_i32 = arith.constant 0 : i32
    %c0_i32_0 = arith.constant 0 : i32
    %c0_i32_1 = arith.constant 0 : i32
    return %c0_i32, %c0_i32_0 : i32, i32
  }
  func.func @transform_2(%arg0: i32) -> (i32, i32) {
    %c0_i32 = arith.constant 0 : i32
    %c0_i32_0 = arith.constant 0 : i32
    %c0_i32_1 = arith.constant 0 : i32
    return %c0_i32, %c0_i32_0 : i32, i32
  }
  func.func @transform_3(%arg0: i32) -> (i32, i32) {
    %c0_i32 = arith.constant 0 : i32
    %c0_i32_0 = arith.constant 0 : i32
    return %arg0, %c0_i32 : i32, i32
  }
}

module attributes {stable_mosaic.version = 11 : i64} {
  func.func @_max4_relu_kernel(%arg0: i32, %arg1: memref<288x128xf32, #tpu.memory_space<vmem>>, %arg2: memref<288x128xf32, #tpu.memory_space<vmem>>, %arg3: memref<288x128xf32, #tpu.memory_space<vmem>>, %arg4: memref<288x128xf32, #tpu.memory_space<vmem>>, %arg5: memref<288x128xf32, #tpu.memory_space<vmem>>) attributes {dimension_semantics = [#tpu.dimension_semantics<parallel>], iteration_bounds = array<i64: 1>, scalar_prefetch = 0 : i64, scratch_operands = 0 : i64, tpu.core_type = #tpu.core_type<tc>, window_params = [{transform_indices = @transform_0, window_bounds = array<i64: 288, 128>}, {transform_indices = @transform_1, window_bounds = array<i64: 288, 128>}, {transform_indices = @transform_2, window_bounds = array<i64: 288, 128>}, {transform_indices = @transform_3, window_bounds = array<i64: 288, 128>}, {transform_indices = @transform_4, window_bounds = array<i64: 288, 128>}]} {
    %c0 = arith.constant 0 : index
    %c0_0 = arith.constant 0 : index
    %0 = vector.load %arg1[%c0, %c0_0] : memref<288x128xf32, #tpu.memory_space<vmem>>, vector<288x128xf32>
    %c0_1 = arith.constant 0 : index
    %c0_2 = arith.constant 0 : index
    %1 = vector.load %arg2[%c0_1, %c0_2] : memref<288x128xf32, #tpu.memory_space<vmem>>, vector<288x128xf32>
    %2 = arith.maximumf %0, %1 : vector<288x128xf32>
    %c0_3 = arith.constant 0 : index
    %c0_4 = arith.constant 0 : index
    %3 = vector.load %arg3[%c0_3, %c0_4] : memref<288x128xf32, #tpu.memory_space<vmem>>, vector<288x128xf32>
    %c0_5 = arith.constant 0 : index
    %c0_6 = arith.constant 0 : index
    %4 = vector.load %arg4[%c0_5, %c0_6] : memref<288x128xf32, #tpu.memory_space<vmem>>, vector<288x128xf32>
    %5 = arith.maximumf %3, %4 : vector<288x128xf32>
    %6 = arith.maximumf %2, %5 : vector<288x128xf32>
    %cst = arith.constant 0.000000e+00 : f32
    %7 = vector.broadcast %cst : f32 to vector<288x128xf32>
    %8 = arith.maximumf %6, %7 : vector<288x128xf32>
    %c0_7 = arith.constant 0 : index
    %c0_8 = arith.constant 0 : index
    %9 = vector.load %arg5[%c0_7, %c0_8] : memref<288x128xf32, #tpu.memory_space<vmem>>, vector<288x128xf32>
    tpu.vector_store %arg5[%c0_7, %c0_8], %8 {strides = array<i32>} : memref<288x128xf32, #tpu.memory_space<vmem>>, vector<288x128xf32>,
    return
  }
  func.func @transform_0(%arg0: i32) -> (i32, i32) {
    %c0_i32 = arith.constant 0 : i32
    %c0_i32_0 = arith.constant 0 : i32
    return %arg0, %c0_i32 : i32, i32
  }
  func.func @transform_1(%arg0: i32) -> (i32, i32) {
    %c0_i32 = arith.constant 0 : i32
    %c0_i32_0 = arith.constant 0 : i32
    return %arg0, %c0_i32 : i32, i32
  }
  func.func @transform_2(%arg0: i32) -> (i32, i32) {
    %c0_i32 = arith.constant 0 : i32
    %c0_i32_0 = arith.constant 0 : i32
    return %arg0, %c0_i32 : i32, i32
  }
  func.func @transform_3(%arg0: i32) -> (i32, i32) {
    %c0_i32 = arith.constant 0 : i32
    %c0_i32_0 = arith.constant 0 : i32
    return %arg0, %c0_i32 : i32, i32
  }
  func.func @transform_4(%arg0: i32) -> (i32, i32) {
    %c0_i32 = arith.constant 0 : i32
    %c0_i32_0 = arith.constant 0 : i32
    return %arg0, %c0_i32 : i32, i32
  }
}

module attributes {stable_mosaic.version = 11 : i64} {
  func.func @_max4_relu_kernel(%arg0: i32, %arg1: memref<32x128xf32, #tpu.memory_space<vmem>>, %arg2: memref<32x128xf32, #tpu.memory_space<vmem>>, %arg3: memref<32x128xf32, #tpu.memory_space<vmem>>, %arg4: memref<32x128xf32, #tpu.memory_space<vmem>>, %arg5: memref<32x128xf32, #tpu.memory_space<vmem>>) attributes {dimension_semantics = [#tpu.dimension_semantics<parallel>], iteration_bounds = array<i64: 1>, scalar_prefetch = 0 : i64, scratch_operands = 0 : i64, tpu.core_type = #tpu.core_type<tc>, window_params = [{transform_indices = @transform_0, window_bounds = array<i64: 32, 128>}, {transform_indices = @transform_1, window_bounds = array<i64: 32, 128>}, {transform_indices = @transform_2, window_bounds = array<i64: 32, 128>}, {transform_indices = @transform_3, window_bounds = array<i64: 32, 128>}, {transform_indices = @transform_4, window_bounds = array<i64: 32, 128>}]} {
    %c0 = arith.constant 0 : index
    %c0_0 = arith.constant 0 : index
    %0 = vector.load %arg1[%c0, %c0_0] : memref<32x128xf32, #tpu.memory_space<vmem>>, vector<32x128xf32>
    %c0_1 = arith.constant 0 : index
    %c0_2 = arith.constant 0 : index
    %1 = vector.load %arg2[%c0_1, %c0_2] : memref<32x128xf32, #tpu.memory_space<vmem>>, vector<32x128xf32>
    %2 = arith.maximumf %0, %1 : vector<32x128xf32>
    %c0_3 = arith.constant 0 : index
    %c0_4 = arith.constant 0 : index
    %3 = vector.load %arg3[%c0_3, %c0_4] : memref<32x128xf32, #tpu.memory_space<vmem>>, vector<32x128xf32>
    %c0_5 = arith.constant 0 : index
    %c0_6 = arith.constant 0 : index
    %4 = vector.load %arg4[%c0_5, %c0_6] : memref<32x128xf32, #tpu.memory_space<vmem>>, vector<32x128xf32>
    %5 = arith.maximumf %3, %4 : vector<32x128xf32>
    %6 = arith.maximumf %2, %5 : vector<32x128xf32>
    %cst = arith.constant 0.000000e+00 : f32
    %7 = vector.broadcast %cst : f32 to vector<32x128xf32>
    %8 = arith.maximumf %6, %7 : vector<32x128xf32>
    %c0_7 = arith.constant 0 : index
    %c0_8 = arith.constant 0 : index
    %9 = vector.load %arg5[%c0_7, %c0_8] : memref<32x128xf32, #tpu.memory_space<vmem>>, vector<32x128xf32>
    tpu.vector_store %arg5[%c0_7, %c0_8], %8 {strides = array<i32>} : memref<32x128xf32, #tpu.memory_space<vmem>>, vector<32x128xf32>,
    return
  }
  func.func @transform_0(%arg0: i32) -> (i32, i32) {
    %c0_i32 = arith.constant 0 : i32
    %c0_i32_0 = arith.constant 0 : i32
    return %arg0, %c0_i32 : i32, i32
  }
  func.func @transform_1(%arg0: i32) -> (i32, i32) {
    %c0_i32 = arith.constant 0 : i32
    %c0_i32_0 = arith.constant 0 : i32
    return %arg0, %c0_i32 : i32, i32
  }
  func.func @transform_2(%arg0: i32) -> (i32, i32) {
    %c0_i32 = arith.constant 0 : i32
    %c0_i32_0 = arith.constant 0 : i32
    return %arg0, %c0_i32 : i32, i32
  }
  func.func @transform_3(%arg0: i32) -> (i32, i32) {
    %c0_i32 = arith.constant 0 : i32
    %c0_i32_0 = arith.constant 0 : i32
    return %arg0, %c0_i32 : i32, i32
  }
  func.func @transform_4(%arg0: i32) -> (i32, i32) {
    %c0_i32 = arith.constant 0 : i32
    %c0_i32_0 = arith.constant 0 : i32
    return %arg0, %c0_i32 : i32, i32
  }
}

module attributes {stable_mosaic.version = 11 : i64} {
  func.func @_matmul_bias_kernel(%arg0: i32, %arg1: memref<128x256xbf16, #tpu.memory_space<vmem>>, %arg2: memref<256x128xbf16, #tpu.memory_space<vmem>>, %arg3: memref<1x128xf32, #tpu.memory_space<vmem>>, %arg4: memref<128x128xf32, #tpu.memory_space<vmem>>) attributes {dimension_semantics = [#tpu.dimension_semantics<parallel>], iteration_bounds = array<i64: 1>, scalar_prefetch = 0 : i64, scratch_operands = 0 : i64, tpu.core_type = #tpu.core_type<tc>, window_params = [{transform_indices = @transform_0, window_bounds = array<i64: 128, 256>}, {pipeline_mode = #tpu.pipeline_mode<synchronous>, transform_indices = @transform_1, window_bounds = array<i64: 256, 128>}, {pipeline_mode = #tpu.pipeline_mode<synchronous>, transform_indices = @transform_2, window_bounds = array<i64: 1, 128>}, {transform_indices = @transform_3, window_bounds = array<i64: 128, 128>}]} {
    %c0 = arith.constant 0 : index
    %c0_0 = arith.constant 0 : index
    %0 = vector.load %arg1[%c0, %c0_0] : memref<128x256xbf16, #tpu.memory_space<vmem>>, vector<128x256xbf16>
    %c0_1 = arith.constant 0 : index
    %c0_2 = arith.constant 0 : index
    %1 = vector.load %arg2[%c0_1, %c0_2] : memref<256x128xbf16, #tpu.memory_space<vmem>>, vector<256x128xbf16>
    %cst = arith.constant dense<0.000000e+00> : vector<128x128xf32>
    %2 = tpu.matmul %0, %1, %cst {dimension_numbers = #tpu.dot_dimension_numbers<[1], [0], [0], [1], [0, 0, 1, 1], [], []>} : vector<128x256xbf16>, vector<256x128xbf16>, vector<128x128xf32> -> vector<128x128xf32>
    %c0_3 = arith.constant 0 : index
    %c0_4 = arith.constant 0 : index
    %3 = vector.load %arg3[%c0_3, %c0_4] : memref<1x128xf32, #tpu.memory_space<vmem>>, vector<1x128xf32>
    %4 = vector.broadcast %3 : vector<1x128xf32> to vector<128x128xf32>
    %5 = arith.addf %2, %4 : vector<128x128xf32>
    %c0_5 = arith.constant 0 : index
    %c0_6 = arith.constant 0 : index
    %6 = vector.load %arg4[%c0_5, %c0_6] : memref<128x128xf32, #tpu.memory_space<vmem>>, vector<128x128xf32>
    tpu.vector_store %arg4[%c0_5, %c0_6], %5 {strides = array<i32>} : memref<128x128xf32, #tpu.memory_space<vmem>>, vector<128x128xf32>,
    return
  }
  func.func @transform_0(%arg0: i32) -> (i32, i32) {
    %c0_i32 = arith.constant 0 : i32
    %c0_i32_0 = arith.constant 0 : i32
    return %arg0, %c0_i32 : i32, i32
  }
  func.func @transform_1(%arg0: i32) -> (i32, i32) {
    %c0_i32 = arith.constant 0 : i32
    %c0_i32_0 = arith.constant 0 : i32
    %c0_i32_1 = arith.constant 0 : i32
    return %c0_i32, %c0_i32_0 : i32, i32
  }
  func.func @transform_2(%arg0: i32) -> (i32, i32) {
    %c0_i32 = arith.constant 0 : i32
    %c0_i32_0 = arith.constant 0 : i32
    %c0_i32_1 = arith.constant 0 : i32
    return %c0_i32, %c0_i32_0 : i32, i32
  }
  func.func @transform_3(%arg0: i32) -> (i32, i32) {
    %c0_i32 = arith.constant 0 : i32
    %c0_i32_0 = arith.constant 0 : i32
    return %arg0, %c0_i32 : i32, i32
  }
}

module attributes {stable_mosaic.version = 11 : i64} {
  func.func @_fc_tail_kernel(%arg0: i32, %arg1: memref<8x320xbf16, #tpu.memory_space<vmem>>, %arg2: memref<320x128xbf16, #tpu.memory_space<vmem>>, %arg3: memref<1x128xf32, #tpu.memory_space<vmem>>, %arg4: memref<128x128xbf16, #tpu.memory_space<vmem>>, %arg5: memref<1x128xf32, #tpu.memory_space<vmem>>, %arg6: memref<8x128xf32, #tpu.memory_space<vmem>>) attributes {dimension_semantics = [#tpu.dimension_semantics<parallel>], iteration_bounds = array<i64: 1>, scalar_prefetch = 0 : i64, scratch_operands = 0 : i64, tpu.core_type = #tpu.core_type<tc>, window_params = [{transform_indices = @transform_0, window_bounds = array<i64: 8, 320>}, {pipeline_mode = #tpu.pipeline_mode<synchronous>, transform_indices = @transform_1, window_bounds = array<i64: 320, 128>}, {pipeline_mode = #tpu.pipeline_mode<synchronous>, transform_indices = @transform_2, window_bounds = array<i64: 1, 128>}, {pipeline_mode = #tpu.pipeline_mode<synchronous>, transform_indices = @transform_3, window_bounds = array<i64: 128, 128>}, {pipeline_mode = #tpu.pipeline_mode<synchronous>, transform_indices = @transform_4, window_bounds = array<i64: 1, 128>}, {transform_indices = @transform_5, window_bounds = array<i64: 8, 128>}]} {
    %c0 = arith.constant 0 : index
    %c0_0 = arith.constant 0 : index
    %0 = vector.load %arg1[%c0, %c0_0] : memref<8x320xbf16, #tpu.memory_space<vmem>>, vector<8x320xbf16>
    %c0_1 = arith.constant 0 : index
    %c0_2 = arith.constant 0 : index
    %1 = vector.load %arg2[%c0_1, %c0_2] : memref<320x128xbf16, #tpu.memory_space<vmem>>, vector<320x128xbf16>
    %cst = arith.constant dense<0.000000e+00> : vector<8x128xf32>
    %2 = tpu.matmul %0, %1, %cst {dimension_numbers = #tpu.dot_dimension_numbers<[1], [0], [0], [1], [0, 0, 1, 1], [], []>} : vector<8x320xbf16>, vector<320x128xbf16>, vector<8x128xf32> -> vector<8x128xf32>
    %c0_3 = arith.constant 0 : index
    %c0_4 = arith.constant 0 : index
    %3 = vector.load %arg3[%c0_3, %c0_4] : memref<1x128xf32, #tpu.memory_space<vmem>>, vector<1x128xf32>
    %4 = vector.broadcast %3 : vector<1x128xf32> to vector<8x128xf32>
    %5 = arith.addf %2, %4 : vector<8x128xf32>
    %cst_5 = arith.constant 0.000000e+00 : f32
    %6 = vector.broadcast %cst_5 : f32 to vector<8x128xf32>
    %7 = arith.maximumf %5, %6 : vector<8x128xf32>
    %8 = arith.truncf %7 : vector<8x128xf32> to vector<8x128xbf16>
    %c0_6 = arith.constant 0 : index
    %c0_7 = arith.constant 0 : index
    %9 = vector.load %arg4[%c0_6, %c0_7] : memref<128x128xbf16, #tpu.memory_space<vmem>>, vector<128x128xbf16>
    %cst_8 = arith.constant dense<0.000000e+00> : vector<8x128xf32>
    %10 = tpu.matmul %8, %9, %cst_8 {dimension_numbers = #tpu.dot_dimension_numbers<[1], [0], [0], [1], [0, 0, 1, 1], [], []>} : vector<8x128xbf16>, vector<128x128xbf16>, vector<8x128xf32> -> vector<8x128xf32>
    %c0_9 = arith.constant 0 : index
    %c0_10 = arith.constant 0 : index
    %11 = vector.load %arg5[%c0_9, %c0_10] : memref<1x128xf32, #tpu.memory_space<vmem>>, vector<1x128xf32>
    %12 = vector.broadcast %11 : vector<1x128xf32> to vector<8x128xf32>
    %13 = arith.addf %10, %12 : vector<8x128xf32>
    %14 = tpu.iota {dimensions = array<i32: 1>} : vector<8x128xi32>
    %c10_i32 = arith.constant 10 : i32
    %15 = vector.broadcast %c10_i32 : i32 to vector<8x128xi32>
    %16 = arith.cmpi slt, %14, %15 : vector<8x128xi32>
    %cst_11 = arith.constant 0xFF800000 : f32
    %17 = vector.broadcast %cst_11 : f32 to vector<8x128xf32>
    %18 = arith.select %16, %13, %17 : vector<8x128xi1>, vector<8x128xf32>
    %cst_12 = arith.constant dense<0xFF800000> : vector<8xf32>
    %19 = vector.multi_reduction <maximumf>, %18, %cst_12 [1] : vector<8x128xf32> to vector<8xf32>
    %20 = vector.shape_cast %19 : vector<8xf32> to vector<8x1xf32>
    %21 = vector.broadcast %20 : vector<8x1xf32> to vector<8x128xf32>
    %22 = arith.subf %18, %21 : vector<8x128xf32>
    %23 = math.exp %22 : vector<8x128xf32>
    %cst_13 = arith.constant 0.000000e+00 : f32
    %24 = vector.broadcast %cst_13 : f32 to vector<8x128xf32>
    %25 = arith.select %16, %23, %24 : vector<8x128xi1>, vector<8x128xf32>
    %cst_14 = arith.constant dense<0.000000e+00> : vector<8xf32>
    %26 = vector.multi_reduction <add>, %25, %cst_14 [1] : vector<8x128xf32> to vector<8xf32>
    %27 = vector.shape_cast %26 : vector<8xf32> to vector<8x1xf32>
    %28 = math.log %27 : vector<8x1xf32>
    %29 = vector.broadcast %20 : vector<8x1xf32> to vector<8x128xf32>
    %30 = arith.subf %18, %29 : vector<8x128xf32>
    %31 = vector.broadcast %28 : vector<8x1xf32> to vector<8x128xf32>
    %32 = arith.subf %30, %31 : vector<8x128xf32>
    %cst_15 = arith.constant 0.000000e+00 : f32
    %33 = vector.broadcast %cst_15 : f32 to vector<8x128xf32>
    %34 = arith.select %16, %32, %33 : vector<8x128xi1>, vector<8x128xf32>
    %c0_16 = arith.constant 0 : index
    %c0_17 = arith.constant 0 : index
    %35 = vector.load %arg6[%c0_16, %c0_17] : memref<8x128xf32, #tpu.memory_space<vmem>>, vector<8x128xf32>
    tpu.vector_store %arg6[%c0_16, %c0_17], %34 {strides = array<i32>} : memref<8x128xf32, #tpu.memory_space<vmem>>, vector<8x128xf32>,
    return
  }
  func.func @transform_0(%arg0: i32) -> (i32, i32) {
    %c0_i32 = arith.constant 0 : i32
    %c0_i32_0 = arith.constant 0 : i32
    return %arg0, %c0_i32 : i32, i32
  }
  func.func @transform_1(%arg0: i32) -> (i32, i32) {
    %c0_i32 = arith.constant 0 : i32
    %c0_i32_0 = arith.constant 0 : i32
    %c0_i32_1 = arith.constant 0 : i32
    return %c0_i32, %c0_i32_0 : i32, i32
  }
  func.func @transform_2(%arg0: i32) -> (i32, i32) {
    %c0_i32 = arith.constant 0 : i32
    %c0_i32_0 = arith.constant 0 : i32
    %c0_i32_1 = arith.constant 0 : i32
    return %c0_i32, %c0_i32_0 : i32, i32
  }
  func.func @transform_3(%arg0: i32) -> (i32, i32) {
    %c0_i32 = arith.constant 0 : i32
    %c0_i32_0 = arith.constant 0 : i32
    %c0_i32_1 = arith.constant 0 : i32
    return %c0_i32, %c0_i32_0 : i32, i32
  }
  func.func @transform_4(%arg0: i32) -> (i32, i32) {
    %c0_i32 = arith.constant 0 : i32
    %c0_i32_0 = arith.constant 0 : i32
    %c0_i32_1 = arith.constant 0 : i32
    return %c0_i32, %c0_i32_0 : i32, i32
  }
  func.func @transform_5(%arg0: i32) -> (i32, i32) {
    %c0_i32 = arith.constant 0 : i32
    %c0_i32_0 = arith.constant 0 : i32
    return %arg0, %c0_i32 : i32, i32
  }
}

</mosaic_0001>

<bundles_post_ra>
// kernel: custom_model_forward.6
= control target key start
LH: loop header
LB: loop body
LE: loop exit
PB: predicated region body
PF: predicated region fallthrough
CT: control target
= control target key end

     0   :  { %s910_s0 = inlined_call_operand.vmem [shape: f32[288,128], index: 0, kind: input, shape index: {}]   ;;  %s911_s1 = inlined_call_operand.vmem [shape: f32[288,128], index: 1, kind: input, shape index: {}]   ;;  %s912_s2 = inlined_call_operand.vmem [shape: f32[288,128], index: 2, kind: input, shape index: {}]   ;;  %s913_s3 = inlined_call_operand.vmem [shape: f32[288,128], index: 3, kind: input, shape index: {}]   ;;  %s914_s4 = inlined_call_operand.vmem [shape: f32[288,128], index: 4, kind: output, shape index: {}]  }
   0x1   :  { %v17_v0 = vld [vmem:[%s910_s0] sm:$0xff]  ;;  %v18_v5 = vld [vmem:[%s910_s0 + $0x8] sm:$0xff]  ;;  %v19_v11 = vld [vmem:[%s910_s0 + $0x10] sm:$0xff] }
   0x2   :  { %v53_v1 = vld [vmem:[%s911_s1] sm:$0xff]  ;;  %v54_v6 = vld [vmem:[%s911_s1 + $0x8] sm:$0xff]  ;;  %v55_v13 = vld [vmem:[%s911_s1 + $0x10] sm:$0xff] }
   0x3   :  { %v125_v2 = vld [vmem:[%s912_s2] sm:$0xff]  ;;  %v89_v3 = vmax.f32 %v17_v0, %v53_v1  ;;  %v90_v8 = vmax.f32 %v18_v5, %v54_v6  ;;  %v126_v9 = vld [vmem:[%s912_s2 + $0x8] sm:$0xff]  ;;  %v127_v14 = vld [vmem:[%s912_s2 + $0x10] sm:$0xff]  ;;  %v91_v17 = vmax.f32 %v19_v11, %v55_v13 }
   0x4   :  { %v161_v4 = vld [vmem:[%s913_s3] sm:$0xff]  ;;  %v162_v10 = vld [vmem:[%s913_s3 + $0x8] sm:$0xff]  ;;  %v163_v15 = vld [vmem:[%s913_s3 + $0x10] sm:$0xff] }
   0x5   :  { %v197_v7 = vmax.f32 %v125_v2, %v161_v4  ;;  %v198_v12 = vmax.f32 %v126_v9, %v162_v10  ;;  %v199_v18 = vmax.f32 %v127_v14, %v163_v15  ;;  %v20_v19 = vld [vmem:[%s910_s0 + $0x18] sm:$0xff]  ;;  %v21_v25 = vld [vmem:[%s910_s0 + $0x20] sm:$0xff]  ;;  %v22_v33 = vld [vmem:[%s910_s0 + $0x28] sm:$0xff] }
   0x6   :  { %v56_v20 = vld [vmem:[%s911_s1 + $0x18] sm:$0xff]  ;;  %v57_v26 = vld [vmem:[%s911_s1 + $0x20] sm:$0xff]  ;;  %v58_v36 = vld [vmem:[%s911_s1 + $0x28] sm:$0xff] }
   0x7   :  { %v233_v16 = vmax.f32 %v89_v3, %v197_v7  ;;  %v128_v21 = vld [vmem:[%s912_s2 + $0x18] sm:$0xff]  ;;  %v234_v22 = vmax.f32 %v90_v8, %v198_v12  ;;  %v92_v23 = vmax.f32 %v20_v19, %v56_v20  ;;  %v235_v28 = vmax.f32 %v91_v17, %v199_v18  ;;  %v129_v31 = vld [vmem:[%s912_s2 + $0x20] sm:$0xff]  ;;  %v130_v37 = vld [vmem:[%s912_s2 + $0x28] sm:$0xff] }
   0x8   :  { %v164_v24 = vld [vmem:[%s913_s3 + $0x18] sm:$0xff]  ;;  %v93_v30 = vmax.f32 %v21_v25, %v57_v26  ;;  %v165_v32 = vld [vmem:[%s913_s3 + $0x20] sm:$0xff]  ;;  %v166_v38 = vld [vmem:[%s913_s3 + $0x28] sm:$0xff]  ;;  %v94_v41 = vmax.f32 %v22_v33, %v58_v36 }
   0x9   :  { %v269_v27 = vmax.f32 %v233_v16, 0.0  ;;  %v200_v29 = vmax.f32 %v128_v21, %v164_v24  ;;  %v270_v34 = vmax.f32 %v234_v22, 0.0  ;;  %v201_v35 = vmax.f32 %v129_v31, %v165_v32  ;;  %v23_v43 = vld [vmem:[%s910_s0 + $0x30] sm:$0xff]  ;;  %v24_v49 = vld [vmem:[%s910_s0 + $0x38] sm:$0xff]  ;;  %v25_v57 = vld [vmem:[%s910_s0 + $0x40] sm:$0xff] }
   0xa   :  { %v271_v39 = vmax.f32 %v235_v28, 0.0  ;;  %v202_v42 = vmax.f32 %v130_v37, %v166_v38  ;;  %v59_v44 = vld [vmem:[%s911_s1 + $0x30] sm:$0xff]  ;;  %v60_v50 = vld [vmem:[%s911_s1 + $0x38] sm:$0xff]  ;;  %v61_v60 = vld [vmem:[%s911_s1 + $0x40] sm:$0xff] }
   0xb   :  { %305 = vst [vmem:[%s914_s4] sm:$0xff] %v269_v27  ;;  %v236_v40 = vmax.f32 %v92_v23, %v200_v29  ;;  %v131_v45 = vld [vmem:[%s912_s2 + $0x30] sm:$0xff]  ;;  %306 = vst [vmem:[%s914_s4 + $0x8] sm:$0xff] %v270_v34  ;;  %v237_v46 = vmax.f32 %v93_v30, %v201_v35  ;;  %v95_v47 = vmax.f32 %v23_v43, %v59_v44  ;;  %v132_v55 = vld [vmem:[%s912_s2 + $0x38] sm:$0xff] }
   0xc   :  { %v167_v48 = vld [vmem:[%s913_s3 + $0x30] sm:$0xff]  ;;  %307 = vst [vmem:[%s914_s4 + $0x10] sm:$0xff] %v271_v39  ;;  %v238_v52 = vmax.f32 %v94_v41, %v202_v42  ;;  %v96_v54 = vmax.f32 %v24_v49, %v60_v50  ;;  %v168_v56 = vld [vmem:[%s913_s3 + $0x38] sm:$0xff]  ;;  %v133_v61 = vld [vmem:[%s912_s2 + $0x40] sm:$0xff]  ;;  %v97_v1 = vmax.f32 %v25_v57, %v61_v60 }
   0xd   :  { %v272_v51 = vmax.f32 %v236_v40, 0.0  ;;  %v203_v53 = vmax.f32 %v131_v45, %v167_v48  ;;  %v273_v58 = vmax.f32 %v237_v46, 0.0  ;;  %v204_v59 = vmax.f32 %v132_v55, %v168_v56  ;;  %v169_v62 = vld [vmem:[%s913_s3 + $0x40] sm:$0xff]  ;;  %v26_v3 = vld [vmem:[%s910_s0 + $0x48] sm:$0xff]  ;;  %v27_v9 = vld [vmem:[%s910_s0 + $0x50] sm:$0xff] }
   0xe   :  { %v274_v63 = vmax.f32 %v238_v52, 0.0  ;;  %v205_v2 = vmax.f32 %v133_v61, %v169_v62  ;;  %v62_v4 = vld [vmem:[%s911_s1 + $0x48] sm:$0xff]  ;;  %v63_v10 = vld [vmem:[%s911_s1 + $0x50] sm:$0xff]  ;;  %v28_v17 = vld [vmem:[%s910_s0 + $0x58] sm:$0xff] }
   0xf   :  { %308 = vst [vmem:[%s914_s4 + $0x18] sm:$0xff] %v272_v51  ;;  %v239_v0 = vmax.f32 %v95_v47, %v203_v53  ;;  %v134_v5 = vld [vmem:[%s912_s2 + $0x48] sm:$0xff]  ;;  %309 = vst [vmem:[%s914_s4 + $0x20] sm:$0xff] %v273_v58  ;;  %v240_v6 = vmax.f32 %v96_v54, %v204_v59  ;;  %v98_v7 = vmax.f32 %v26_v3, %v62_v4  ;;  %v135_v15 = vld [vmem:[%s912_s2 + $0x50] sm:$0xff] }
  0x10   :  { %v170_v8 = vld [vmem:[%s913_s3 + $0x48] sm:$0xff]  ;;  %310 = vst [vmem:[%s914_s4 + $0x28] sm:$0xff] %v274_v63  ;;  %v241_v12 = vmax.f32 %v97_v1, %v205_v2  ;;  %v99_v14 = vmax.f32 %v27_v9, %v63_v10  ;;  %v171_v16 = vld [vmem:[%s913_s3 + $0x50] sm:$0xff]  ;;  %v64_v20 = vld [vmem:[%s911_s1 + $0x58] sm:$0xff] }
  0x11   :  { %v275_v11 = vmax.f32 %v239_v0, 0.0  ;;  %v206_v13 = vmax.f32 %v134_v5, %v170_v8  ;;  %v276_v18 = vmax.f32 %v240_v6, 0.0  ;;  %v207_v19 = vmax.f32 %v135_v15, %v171_v16  ;;  %v136_v21 = vld [vmem:[%s912_s2 + $0x58] sm:$0xff]  ;;  %v29_v27 = vld [vmem:[%s910_s0 + $0x60] sm:$0xff]  ;;  %v30_v33 = vld [vmem:[%s910_s0 + $0x68] sm:$0xff] }
  0x12   :  { %v172_v22 = vld [vmem:[%s913_s3 + $0x58] sm:$0xff]  ;;  %v277_v23 = vmax.f32 %v241_v12, 0.0  ;;  %v100_v25 = vmax.f32 %v28_v17, %v64_v20  ;;  %v65_v28 = vld [vmem:[%s911_s1 + $0x60] sm:$0xff]  ;;  %v66_v34 = vld [vmem:[%s911_s1 + $0x68] sm:$0xff] }
  0x13   :  { %311 = vst [vmem:[%s914_s4 + $0x30] sm:$0xff] %v275_v11  ;;  %v242_v24 = vmax.f32 %v98_v7, %v206_v13  ;;  %v208_v26 = vmax.f32 %v136_v21, %v172_v22  ;;  %v137_v29 = vld [vmem:[%s912_s2 + $0x60] sm:$0xff]  ;;  %312 = vst [vmem:[%s914_s4 + $0x38] sm:$0xff] %v276_v18  ;;  %v243_v30 = vmax.f32 %v99_v14, %v207_v19  ;;  %v138_v39 = vld [vmem:[%s912_s2 + $0x68] sm:$0xff] }
  0x14   :  { %v101_v31 = vmax.f32 %v29_v27, %v65_v28  ;;  %v173_v32 = vld [vmem:[%s913_s3 + $0x60] sm:$0xff]  ;;  %313 = vst [vmem:[%s914_s4 + $0x40] sm:$0xff] %v277_v23  ;;  %v102_v38 = vmax.f32 %v30_v33, %v66_v34  ;;  %v174_v40 = vld [vmem:[%s913_s3 + $0x68] sm:$0xff]  ;;  %v31_v41 = vld [vmem:[%s910_s0 + $0x70] sm:$0xff] }
  0x15   :  { %v278_v35 = vmax.f32 %v242_v24, 0.0  ;;  %v244_v36 = vmax.f32 %v100_v25, %v208_v26  ;;  %v209_v37 = vmax.f32 %v137_v29, %v173_v32  ;;  %v279_v42 = vmax.f32 %v243_v30, 0.0  ;;  %v67_v44 = vld [vmem:[%s911_s1 + $0x70] sm:$0xff]  ;;  %v32_v51 = vld [vmem:[%s910_s0 + $0x78] sm:$0xff]  ;;  %v33_v57 = vld [vmem:[%s910_s0 + $0x80] sm:$0xff] }
  0x16   :  { %v210_v43 = vmax.f32 %v138_v39, %v174_v40  ;;  %v139_v45 = vld [vmem:[%s912_s2 + $0x70] sm:$0xff]  ;;  %v103_v49 = vmax.f32 %v31_v41, %v67_v44  ;;  %v68_v52 = vld [vmem:[%s911_s1 + $0x78] sm:$0xff]  ;;  %v69_v58 = vld [vmem:[%s911_s1 + $0x80] sm:$0xff] }
  0x17   :  { %v175_v46 = vld [vmem:[%s913_s3 + $0x70] sm:$0xff]  ;;  %314 = vst [vmem:[%s914_s4 + $0x48] sm:$0xff] %v278_v35  ;;  %v280_v47 = vmax.f32 %v244_v36, 0.0  ;;  %v245_v48 = vmax.f32 %v101_v31, %v209_v37  ;;  %v140_v53 = vld [vmem:[%s912_s2 + $0x78] sm:$0xff]  ;;  %315 = vst [vmem:[%s914_s4 + $0x50] sm:$0xff] %v279_v42  ;;  %v104_v55 = vmax.f32 %v32_v51, %v68_v52  ;;  %v105_v62 = vmax.f32 %v33_v57, %v69_v58 }
  0x18   :  { %v211_v50 = vmax.f32 %v139_v45, %v175_v46  ;;  %v246_v54 = vmax.f32 %v102_v38, %v210_v43  ;;  %v176_v56 = vld [vmem:[%s913_s3 + $0x78] sm:$0xff]  ;;  %v141_v63 = vld [vmem:[%s912_s2 + $0x80] sm:$0xff]  ;;  %v34_v1 = vld [vmem:[%s910_s0 + $0x88] sm:$0xff] }
  0x19   :  { %316 = vst [vmem:[%s914_s4 + $0x58] sm:$0xff] %v280_v47  ;;  %v281_v59 = vmax.f32 %v245_v48, 0.0  ;;  %v212_v61 = vmax.f32 %v140_v53, %v176_v56  ;;  %v177_v0 = vld [vmem:[%s913_s3 + $0x80] sm:$0xff]  ;;  %v70_v4 = vld [vmem:[%s911_s1 + $0x88] sm:$0xff]  ;;  %v35_v11 = vld [vmem:[%s910_s0 + $0x90] sm:$0xff] }
  0x1a   :  { %v247_v60 = vmax.f32 %v103_v49, %v211_v50  ;;  %v282_v2 = vmax.f32 %v246_v54, 0.0  ;;  %v213_v3 = vmax.f32 %v141_v63, %v177_v0  ;;  %v142_v5 = vld [vmem:[%s912_s2 + $0x88] sm:$0xff]  ;;  %v106_v9 = vmax.f32 %v34_v1, %v70_v4  ;;  %v71_v12 = vld [vmem:[%s911_s1 + $0x90] sm:$0xff]  ;;  %v36_v17 = vld [vmem:[%s910_s0 + $0x98] sm:$0xff] }
  0x1b   :  { %v178_v6 = vld [vmem:[%s913_s3 + $0x88] sm:$0xff]  ;;  %317 = vst [vmem:[%s914_s4 + $0x60] sm:$0xff] %v281_v59  ;;  %v248_v8 = vmax.f32 %v104_v55, %v212_v61  ;;  %v143_v13 = vld [vmem:[%s912_s2 + $0x90] sm:$0xff]  ;;  %v107_v15 = vmax.f32 %v35_v11, %v71_v12  ;;  %v72_v18 = vld [vmem:[%s911_s1 + $0x98] sm:$0xff] }
  0x1c   :  { %v283_v7 = vmax.f32 %v247_v60, 0.0  ;;  %v214_v10 = vmax.f32 %v142_v5, %v178_v6  ;;  %318 = vst [vmem:[%s914_s4 + $0x68] sm:$0xff] %v282_v2  ;;  %v249_v14 = vmax.f32 %v105_v62, %v213_v3  ;;  %v179_v16 = vld [vmem:[%s913_s3 + $0x90] sm:$0xff]  ;;  %v108_v22 = vmax.f32 %v36_v17, %v72_v18  ;;  %v144_v23 = vld [vmem:[%s912_s2 + $0x98] sm:$0xff]  ;;  %v37_v25 = vld [vmem:[%s910_s0 + $0xa0] sm:$0xff] }
  0x1d   :  { %v284_v19 = vmax.f32 %v248_v8, 0.0  ;;  %v215_v21 = vmax.f32 %v143_v13, %v179_v16  ;;  %v180_v24 = vld [vmem:[%s913_s3 + $0x98] sm:$0xff]  ;;  %v73_v28 = vld [vmem:[%s911_s1 + $0xa0] sm:$0xff]  ;;  %v38_v35 = vld [vmem:[%s910_s0 + $0xa8] sm:$0xff] }
  0x1e   :  { %319 = vst [vmem:[%s914_s4 + $0x70] sm:$0xff] %v283_v7  ;;  %v250_v20 = vmax.f32 %v106_v9, %v214_v10  ;;  %v285_v26 = vmax.f32 %v249_v14, 0.0  ;;  %v216_v27 = vmax.f32 %v144_v23, %v180_v24  ;;  %v145_v29 = vld [vmem:[%s912_s2 + $0xa0] sm:$0xff]  ;;  %v109_v33 = vmax.f32 %v37_v25, %v73_v28  ;;  %v74_v36 = vld [vmem:[%s911_s1 + $0xa8] sm:$0xff]  ;;  %v39_v41 = vld [vmem:[%s910_s0 + $0xb0] sm:$0xff] }
  0x1f   :  { %v181_v30 = vld [vmem:[%s913_s3 + $0xa0] sm:$0xff]  ;;  %320 = vst [vmem:[%s914_s4 + $0x78] sm:$0xff] %v284_v19  ;;  %v251_v32 = vmax.f32 %v107_v15, %v215_v21  ;;  %v146_v37 = vld [vmem:[%s912_s2 + $0xa8] sm:$0xff]  ;;  %v110_v39 = vmax.f32 %v38_v35, %v74_v36  ;;  %v75_v42 = vld [vmem:[%s911_s1 + $0xb0] sm:$0xff] }
  0x20   :  { %v286_v31 = vmax.f32 %v250_v20, 0.0  ;;  %v217_v34 = vmax.f32 %v145_v29, %v181_v30  ;;  %321 = vst [vmem:[%s914_s4 + $0x80] sm:$0xff] %v285_v26  ;;  %v252_v38 = vmax.f32 %v108_v22, %v216_v27  ;;  %v182_v40 = vld [vmem:[%s913_s3 + $0xa8] sm:$0xff]  ;;  %v111_v46 = vmax.f32 %v39_v41, %v75_v42  ;;  %v147_v47 = vld [vmem:[%s912_s2 + $0xb0] sm:$0xff]  ;;  %v40_v49 = vld [vmem:[%s910_s0 + $0xb8] sm:$0xff] }
  0x21   :  { %v287_v43 = vmax.f32 %v251_v32, 0.0  ;;  %v218_v45 = vmax.f32 %v146_v37, %v182_v40  ;;  %v183_v48 = vld [vmem:[%s913_s3 + $0xb0] sm:$0xff]  ;;  %v76_v52 = vld [vmem:[%s911_s1 + $0xb8] sm:$0xff]  ;;  %v41_v59 = vld [vmem:[%s910_s0 + $0xc0] sm:$0xff] }
  0x22   :  { %322 = vst [vmem:[%s914_s4 + $0x88] sm:$0xff] %v286_v31  ;;  %v253_v44 = vmax.f32 %v109_v33, %v217_v34  ;;  %v288_v50 = vmax.f32 %v252_v38, 0.0  ;;  %v219_v51 = vmax.f32 %v147_v47, %v183_v48  ;;  %v148_v53 = vld [vmem:[%s912_s2 + $0xb8] sm:$0xff]  ;;  %v112_v57 = vmax.f32 %v40_v49, %v76_v52  ;;  %v77_v60 = vld [vmem:[%s911_s1 + $0xc0] sm:$0xff]  ;;  %v42_v1 = vld [vmem:[%s910_s0 + $0xc8] sm:$0xff] }
  0x23   :  { %v184_v54 = vld [vmem:[%s913_s3 + $0xb8] sm:$0xff]  ;;  %323 = vst [vmem:[%s914_s4 + $0x90] sm:$0xff] %v287_v43  ;;  %v254_v56 = vmax.f32 %v110_v39, %v218_v45  ;;  %v149_v61 = vld [vmem:[%s912_s2 + $0xc0] sm:$0xff]  ;;  %v113_v63 = vmax.f32 %v41_v59, %v77_v60  ;;  %v78_v2 = vld [vmem:[%s911_s1 + $0xc8] sm:$0xff] }
  0x24   :  { %v289_v55 = vmax.f32 %v253_v44, 0.0  ;;  %v220_v58 = vmax.f32 %v148_v53, %v184_v54  ;;  %324 = vst [vmem:[%s914_s4 + $0x98] sm:$0xff] %v288_v50  ;;  %v255_v62 = vmax.f32 %v111_v46, %v219_v51  ;;  %v185_v0 = vld [vmem:[%s913_s3 + $0xc0] sm:$0xff]  ;;  %v114_v6 = vmax.f32 %v42_v1, %v78_v2  ;;  %v150_v7 = vld [vmem:[%s912_s2 + $0xc8] sm:$0xff]  ;;  %v43_v9 = vld [vmem:[%s910_s0 + $0xd0] sm:$0xff] }
  0x25   :  { %v290_v3 = vmax.f32 %v254_v56, 0.0  ;;  %v221_v5 = vmax.f32 %v149_v61, %v185_v0  ;;  %v186_v8 = vld [vmem:[%s913_s3 + $0xc8] sm:$0xff]  ;;  %v79_v12 = vld [vmem:[%s911_s1 + $0xd0] sm:$0xff]  ;;  %v44_v19 = vld [vmem:[%s910_s0 + $0xd8] sm:$0xff] }
  0x26   :  { %325 = vst [vmem:[%s914_s4 + $0xa0] sm:$0xff] %v289_v55  ;;  %v256_v4 = vmax.f32 %v112_v57, %v220_v58  ;;  %v291_v10 = vmax.f32 %v255_v62, 0.0  ;;  %v222_v11 = vmax.f32 %v150_v7, %v186_v8  ;;  %v151_v13 = vld [vmem:[%s912_s2 + $0xd0] sm:$0xff]  ;;  %v115_v17 = vmax.f32 %v43_v9, %v79_v12  ;;  %v80_v20 = vld [vmem:[%s911_s1 + $0xd8] sm:$0xff]  ;;  %v45_v25 = vld [vmem:[%s910_s0 + $0xe0] sm:$0xff] }
  0x27   :  { %v187_v14 = vld [vmem:[%s913_s3 + $0xd0] sm:$0xff]  ;;  %326 = vst [vmem:[%s914_s4 + $0xa8] sm:$0xff] %v290_v3  ;;  %v257_v16 = vmax.f32 %v113_v63, %v221_v5  ;;  %v152_v21 = vld [vmem:[%s912_s2 + $0xd8] sm:$0xff]  ;;  %v116_v23 = vmax.f32 %v44_v19, %v80_v20  ;;  %v81_v26 = vld [vmem:[%s911_s1 + $0xe0] sm:$0xff] }
  0x28   :  { %v292_v15 = vmax.f32 %v256_v4, 0.0  ;;  %v223_v18 = vmax.f32 %v151_v13, %v187_v14  ;;  %327 = vst [vmem:[%s914_s4 + $0xb0] sm:$0xff] %v291_v10  ;;  %v258_v22 = vmax.f32 %v114_v6, %v222_v11  ;;  %v188_v24 = vld [vmem:[%s913_s3 + $0xd8] sm:$0xff]  ;;  %v117_v30 = vmax.f32 %v45_v25, %v81_v26  ;;  %v153_v31 = vld [vmem:[%s912_s2 + $0xe0] sm:$0xff]  ;;  %v46_v33 = vld [vmem:[%s910_s0 + $0xe8] sm:$0xff] }
  0x29   :  { %v293_v27 = vmax.f32 %v257_v16, 0.0  ;;  %v224_v29 = vmax.f32 %v152_v21, %v188_v24  ;;  %v189_v32 = vld [vmem:[%s913_s3 + $0xe0] sm:$0xff]  ;;  %v82_v36 = vld [vmem:[%s911_s1 + $0xe8] sm:$0xff]  ;;  %v47_v43 = vld [vmem:[%s910_s0 + $0xf0] sm:$0xff] }
  0x2a   :  { %328 = vst [vmem:[%s914_s4 + $0xb8] sm:$0xff] %v292_v15  ;;  %v259_v28 = vmax.f32 %v115_v17, %v223_v18  ;;  %v294_v34 = vmax.f32 %v258_v22, 0.0  ;;  %v225_v35 = vmax.f32 %v153_v31, %v189_v32  ;;  %v154_v37 = vld [vmem:[%s912_s2 + $0xe8] sm:$0xff]  ;;  %v118_v41 = vmax.f32 %v46_v33, %v82_v36  ;;  %v83_v44 = vld [vmem:[%s911_s1 + $0xf0] sm:$0xff]  ;;  %v48_v49 = vld [vmem:[%s910_s0 + $0xf8] sm:$0xff] }
  0x2b   :  { %v190_v38 = vld [vmem:[%s913_s3 + $0xe8] sm:$0xff]  ;;  %329 = vst [vmem:[%s914_s4 + $0xc0] sm:$0xff] %v293_v27  ;;  %v260_v40 = vmax.f32 %v116_v23, %v224_v29  ;;  %v155_v45 = vld [vmem:[%s912_s2 + $0xf0] sm:$0xff]  ;;  %v119_v47 = vmax.f32 %v47_v43, %v83_v44  ;;  %v84_v50 = vld [vmem:[%s911_s1 + $0xf8] sm:$0xff] }
  0x2c   :  { %v295_v39 = vmax.f32 %v259_v28, 0.0  ;;  %v226_v42 = vmax.f32 %v154_v37, %v190_v38  ;;  %330 = vst [vmem:[%s914_s4 + $0xc8] sm:$0xff] %v294_v34  ;;  %v261_v46 = vmax.f32 %v117_v30, %v225_v35  ;;  %v191_v48 = vld [vmem:[%s913_s3 + $0xf0] sm:$0xff]  ;;  %v120_v54 = vmax.f32 %v48_v49, %v84_v50  ;;  %v156_v55 = vld [vmem:[%s912_s2 + $0xf8] sm:$0xff]  ;;  %v49_v57 = vld [vmem:[%s910_s0 + $0x100] sm:$0xff] }
  0x2d   :  { %v296_v51 = vmax.f32 %v260_v40, 0.0  ;;  %v227_v53 = vmax.f32 %v155_v45, %v191_v48  ;;  %v192_v56 = vld [vmem:[%s913_s3 + $0xf8] sm:$0xff]  ;;  %v85_v60 = vld [vmem:[%s911_s1 + $0x100] sm:$0xff]  ;;  %v50_v3 = vld [vmem:[%s910_s0 + $0x108] sm:$0xff] }
  0x2e   :  { %331 = vst [vmem:[%s914_s4 + $0xd0] sm:$0xff] %v295_v39  ;;  %v262_v52 = vmax.f32 %v118_v41, %v226_v42  ;;  %v297_v58 = vmax.f32 %v261_v46, 0.0  ;;  %v228_v59 = vmax.f32 %v156_v55, %v192_v56  ;;  %v157_v61 = vld [vmem:[%s912_s2 + $0x100] sm:$0xff]  ;;  %v121_v1 = vmax.f32 %v49_v57, %v85_v60  ;;  %v86_v4 = vld [vmem:[%s911_s1 + $0x108] sm:$0xff]  ;;  %v51_v9 = vld [vmem:[%s910_s0 + $0x110] sm:$0xff] }
  0x2f   :  { %v193_v62 = vld [vmem:[%s913_s3 + $0x100] sm:$0xff]  ;;  %332 = vst [vmem:[%s914_s4 + $0xd8] sm:$0xff] %v296_v51  ;;  %v263_v0 = vmax.f32 %v119_v47, %v227_v53  ;;  %v158_v5 = vld [vmem:[%s912_s2 + $0x108] sm:$0xff]  ;;  %v122_v7 = vmax.f32 %v50_v3, %v86_v4  ;;  %v87_v10 = vld [vmem:[%s911_s1 + $0x110] sm:$0xff] }
  0x30   :  { %v298_v63 = vmax.f32 %v262_v52, 0.0  ;;  %v229_v2 = vmax.f32 %v157_v61, %v193_v62  ;;  %333 = vst [vmem:[%s914_s4 + $0xe0] sm:$0xff] %v297_v58  ;;  %v264_v6 = vmax.f32 %v120_v54, %v228_v59  ;;  %v194_v8 = vld [vmem:[%s913_s3 + $0x108] sm:$0xff]  ;;  %v123_v14 = vmax.f32 %v51_v9, %v87_v10  ;;  %v159_v15 = vld [vmem:[%s912_s2 + $0x110] sm:$0xff]  ;;  %v52_v17 = vld [vmem:[%s910_s0 + $0x118] sm:$0xff] }
  0x31   :  { %v299_v11 = vmax.f32 %v263_v0, 0.0  ;;  %v230_v13 = vmax.f32 %v158_v5, %v194_v8  ;;  %v195_v16 = vld [vmem:[%s913_s3 + $0x110] sm:$0xff]  ;;  %v88_v20 = vld [vmem:[%s911_s1 + $0x118] sm:$0xff] }
  0x32   :  { %334 = vst [vmem:[%s914_s4 + $0xe8] sm:$0xff] %v298_v63  ;;  %v265_v12 = vmax.f32 %v121_v1, %v229_v2  ;;  %v300_v18 = vmax.f32 %v264_v6, 0.0  ;;  %v231_v19 = vmax.f32 %v159_v15, %v195_v16  ;;  %v160_v21 = vld [vmem:[%s912_s2 + $0x118] sm:$0xff]  ;;  %v124_v25 = vmax.f32 %v52_v17, %v88_v20 }
  0x33   :  { %v196_v22 = vld [vmem:[%s913_s3 + $0x118] sm:$0xff]  ;;  %335 = vst [vmem:[%s914_s4 + $0xf0] sm:$0xff] %v299_v11  ;;  %v266_v24 = vmax.f32 %v122_v7, %v230_v13 }
  0x34   :  { %v301_v23 = vmax.f32 %v265_v12, 0.0  ;;  %v232_v26 = vmax.f32 %v160_v21, %v196_v22  ;;  %336 = vst [vmem:[%s914_s4 + $0xf8] sm:$0xff] %v300_v18  ;;  %v267_v27 = vmax.f32 %v123_v14, %v231_v19 }
  0x35   :  { %v302_v28 = vmax.f32 %v266_v24, 0.0 }
  0x36   :  { %337 = vst [vmem:[%s914_s4 + $0x100] sm:$0xff] %v301_v23  ;;  %v268_v29 = vmax.f32 %v124_v25, %v232_v26  ;;  %v303_v30 = vmax.f32 %v267_v27, 0.0 }
  0x37   :  { %338 = vst [vmem:[%s914_s4 + $0x108] sm:$0xff] %v302_v28 }
  0x38   :  { %v304_v31 = vmax.f32 %v268_v29, 0.0  ;;  %339 = vst [vmem:[%s914_s4 + $0x110] sm:$0xff] %v303_v30 }
  0x3a   :  { %340 = vst [vmem:[%s914_s4 + $0x118] sm:$0xff] %v304_v31 }

// kernel: custom_model_forward.5
= control target key start
LH: loop header
LB: loop body
LE: loop exit
PB: predicated region body
PF: predicated region fallthrough
CT: control target
= control target key end

     0   :  { %s1175_s12 = smov 0   ;;  %s1389_s0 = inlined_call_operand.vmem [shape: bf16[1536,128], index: 0, kind: input, shape index: {}]   ;;  %s1390_s1 = inlined_call_operand.vmem [shape: bf16[128,128], index: 1, kind: input, shape index: {}]   ;;  %s1391_s2 = inlined_call_operand.vmem [shape: f32[1,128], index: 2, kind: input, shape index: {}]   ;;  %s1392_s3 = inlined_call_operand.vmem [shape: f32[1536,128], index: 3, kind: output, shape index: {}]  }
   0x1 LB: > { %s911_s13 = sadd.s32 4294967295, %s1153_s12   ;;  %p915_p0 = scmp.ge.s32.totalorder %s1153_s12, 1  ;;  %s1153_s12 = sphi %s1175_s12, %s13_s12  }
   0x2   : > { %p138_p1 = scmp.lt.s32.totalorder %s1153_s12, 4 }
   0x4   : > { %p139_p2 = pnand %p915_p0, %p138_p1 }
   0x5   : > { %s916_s16 = sshll.u32 (!%p139_p2), %s911_s13, 6 }
   0x6   : > { %142 = sbr.rel (%p139_p2) target bundleno = 302 (0x12e), region = 32  ;;  %p163_p3 = scmp.lt.s32.totalorder (!%p139_p2), %s916_s16, 191 }
   0xb   : > { %v1107_v0 = vld [vmem:[%s1390_s1 + $0x38] sm:$0xff]   ;;  %v1108_v1 = vld [vmem:[%s1390_s1 + $0x30] sm:$0xff]   ;;  %s1394_s16 = smov (!%p163_p3, %s916_s16), 191  ;;  %v1109_v2 = vld [vmem:[%s1390_s1 + $0x28] sm:$0xff]  }
   0xc   : > { %1003 = vmatprep.subr.bf16.mxu0 %v1107_v0  ;;  %1083 = vmatprep.subr.bf16.mxu1 %v1107_v0  ;;  %s917_s21 = sshll.u32 %s1394_s16, 2  ;;  %v1110_v3 = vld [vmem:[%s1390_s1 + $0x20] sm:$0xff]   ;;  %v1111_v6 = vld [vmem:[%s1390_s1 + $0x18] sm:$0xff]   ;;  %v1112_v7 = vld [vmem:[%s1390_s1 + $0x10] sm:$0xff]   ;;  %s919_s8 = sshll.u32 %s1394_s16, 3 }
   0xd   : > { %1004 = vmatpush3.bf16.msra.mxu0 %v1107_v0  ;;  %1091 = vmatpush3.bf16.msra.mxu1 %v1107_v0  ;;  %s1198_s24 = scalar_lea.vmem %s1389_s0, %s917_s21  ;;  %v1113_v8 = vld [vmem:[%s1390_s1 + $0x8] sm:$0xff]   ;;  %v1114_v9 = vld [vmem:[%s1390_s1] sm:$0xff]   ;;  %s1256_s14 = scalar_lea.vmem %s1392_s3, %s919_s8 }
   0xe   : > { %1005 = vmatprep.subr.bf16.mxu0 %v1108_v1  ;;  %1084 = vmatprep.subr.bf16.mxu1 %v1108_v1  ;;  %v1115_v4 = vld [vmem:[%s1198_s24] sm:$0xff]   ;;  %v1117_v10 = vld [vmem:[%s1198_s24 + $0x8] sm:$0xff]   ;;  %v1119_v12 = vld [vmem:[%s1198_s24 + $0x10] sm:$0xff]  }
   0xf   : > { %v1116_v5 = vld [vmem:[%s1198_s24 + $0x80] sm:$0xff]   ;;  %1019 = vmatprep.mubr.bf16.mxu0 %v1115_v4  ;;  %v1118_v11 = vld [vmem:[%s1198_s24 + $0x88] sm:$0xff]   ;;  %v1120_v13 = vld [vmem:[%s1198_s24 + $0x90] sm:$0xff]  }
  0x10   : > { %1051 = vmatprep.mubr.bf16.mxu1 %v1116_v5  ;;  %v1121_v14 = vld [vmem:[%s1198_s24 + $0x18] sm:$0xff]   ;;  %v1123_v16 = vld [vmem:[%s1198_s24 + $0x20] sm:$0xff]   ;;  %v1125_v18 = vld [vmem:[%s1198_s24 + $0x28] sm:$0xff]  }
  0x11   : > { %1006 = vmatpush3.bf16.msra.mxu0 %v1108_v1  ;;  %1092 = vmatpush3.bf16.msra.mxu1 %v1108_v1  ;;  %v1122_v15 = vld [vmem:[%s1198_s24 + $0x98] sm:$0xff]   ;;  %v1124_v17 = vld [vmem:[%s1198_s24 + $0xa0] sm:$0xff]   ;;  %v1126_v19 = vld [vmem:[%s1198_s24 + $0xa8] sm:$0xff]  }
  0x12   : > { %1007 = vmatprep.subr.bf16.mxu0 %v1109_v2  ;;  %1085 = vmatprep.subr.bf16.mxu1 %v1109_v2  ;;  %v1127_v20 = vld [vmem:[%s1198_s24 + $0x30] sm:$0xff]   ;;  %v1129_v22 = vld [vmem:[%s1198_s24 + $0x38] sm:$0xff]   ;;  %v1131_v24 = vld [vmem:[%s1198_s24 + $0x40] sm:$0xff]  }
  0x13   : > { %v1128_v21 = vld [vmem:[%s1198_s24 + $0xb0] sm:$0xff]   ;;  %v1130_v23 = vld [vmem:[%s1198_s24 + $0xb8] sm:$0xff]   ;;  %v1132_v25 = vld [vmem:[%s1198_s24 + $0xc0] sm:$0xff]  }
  0x14   : > { %v1133_v26 = vld [vmem:[%s1198_s24 + $0x48] sm:$0xff]   ;;  %v1135_v28 = vld [vmem:[%s1198_s24 + $0x50] sm:$0xff]   ;;  %v1137_v30 = vld [vmem:[%s1198_s24 + $0x58] sm:$0xff]  }
  0x15   : > { %1008 = vmatpush3.bf16.msra.mxu0 %v1109_v2  ;;  %1093 = vmatpush3.bf16.msra.mxu1 %v1109_v2  ;;  %v1134_v27 = vld [vmem:[%s1198_s24 + $0xc8] sm:$0xff]   ;;  %v1136_v29 = vld [vmem:[%s1198_s24 + $0xd0] sm:$0xff]   ;;  %v1138_v31 = vld [vmem:[%s1198_s24 + $0xd8] sm:$0xff]  }
  0x16   : > { %1009 = vmatprep.subr.bf16.mxu0 %v1110_v3  ;;  %1086 = vmatprep.subr.bf16.mxu1 %v1110_v3  ;;  %v1139_v32 = vld [vmem:[%s1198_s24 + $0x60] sm:$0xff]   ;;  %v1141_v34 = vld [vmem:[%s1198_s24 + $0x68] sm:$0xff]   ;;  %v1143_v36 = vld [vmem:[%s1198_s24 + $0x70] sm:$0xff]  }
  0x17   : > { %v1140_v33 = vld [vmem:[%s1198_s24 + $0xe0] sm:$0xff]   ;;  %v1142_v35 = vld [vmem:[%s1198_s24 + $0xe8] sm:$0xff]   ;;  %v1144_v37 = vld [vmem:[%s1198_s24 + $0xf0] sm:$0xff]  }
  0x18   : > { %v1145_v38 = vld [vmem:[%s1198_s24 + $0x78] sm:$0xff]   ;;  %v1251_v40 = vld [vmem:[%s1391_s2] ss:$0 sm:$0xff] }
  0x19   : > { %1010 = vmatpush3.bf16.msra.mxu0 %v1110_v3  ;;  %1094 = vmatpush3.bf16.msra.mxu1 %v1110_v3  ;;  %v1146_v39 = vld [vmem:[%s1198_s24 + $0xf8] sm:$0xff]  }
  0x1a   : > { %1011 = vmatprep.subr.bf16.mxu0 %v1111_v6  ;;  %1087 = vmatprep.subr.bf16.mxu1 %v1111_v6 }
  0x1d   : > { %1012 = vmatpush3.bf16.msra.mxu0 %v1111_v6  ;;  %1095 = vmatpush3.bf16.msra.mxu1 %v1111_v6 }
  0x1e   : > { %1013 = vmatprep.subr.bf16.mxu0 %v1112_v7  ;;  %1088 = vmatprep.subr.bf16.mxu1 %v1112_v7 }
  0x21   : > { %1014 = vmatpush3.bf16.msra.mxu0 %v1112_v7  ;;  %1096 = vmatpush3.bf16.msra.mxu1 %v1112_v7 }
  0x22   : > { %1015 = vmatprep.subr.bf16.mxu0 %v1113_v8  ;;  %1089 = vmatprep.subr.bf16.mxu1 %v1113_v8 }
  0x25   : > { %1016 = vmatpush3.bf16.msra.mxu0 %v1113_v8  ;;  %1097 = vmatpush3.bf16.msra.mxu1 %v1113_v8 }
  0x26   : > { %1017 = vmatprep.subr.bf16.mxu0 %v1114_v9  ;;  %1090 = vmatprep.subr.bf16.mxu1 %v1114_v9 }
  0x29   : > { %1018 = vmatpush3.bf16.msra.mxu0 %v1114_v9  ;;  %1098 = vmatpush3.bf16.msra.mxu1 %v1114_v9 }
  0x2c   : > { %1020 = vmatmul.mubr.bf16.vlgmr.msra.gmra.mxu0 %v1117_v10  ;;  %1052 = vmatmul.mubr.bf16.vlgmr.msra.gmra.mxu1 %v1118_v11 }
  0x2d   : > { %1023 = vmatprep.mubr.bf16.mxu0 %v1119_v12  ;;  %1055 = vmatprep.mubr.bf16.mxu1 %v1120_v13 }
  0x34   : > { %1024 = vmatmul.mubr.bf16.gmra.mxu0 %v1121_v14  ;;  %1056 = vmatmul.mubr.bf16.gmra.mxu1 %v1122_v15 }
  0x35   : > { %1027 = vmatprep.mubr.bf16.mxu0 %v1123_v16  ;;  %1059 = vmatprep.mubr.bf16.mxu1 %v1124_v17 }
  0x3c   : > { %1028 = vmatmul.mubr.bf16.gmra.mxu0 %v1125_v18  ;;  %1060 = vmatmul.mubr.bf16.gmra.mxu1 %v1126_v19 }
  0x3d   : > { %1031 = vmatprep.mubr.bf16.mxu0 %v1127_v20  ;;  %1063 = vmatprep.mubr.bf16.mxu1 %v1128_v21 }
  0x44   : > { %1032 = vmatmul.mubr.bf16.gmra.mxu0 %v1129_v22  ;;  %1064 = vmatmul.mubr.bf16.gmra.mxu1 %v1130_v23 }
  0x45   : > { %1035 = vmatprep.mubr.bf16.mxu0 %v1131_v24  ;;  %1067 = vmatprep.mubr.bf16.mxu1 %v1132_v25 }
  0x4c   : > { %1036 = vmatmul.mubr.bf16.gmra.mxu0 %v1133_v26  ;;  %1068 = vmatmul.mubr.bf16.gmra.mxu1 %v1134_v27 }
  0x4d   : > { %1039 = vmatprep.mubr.bf16.mxu0 %v1135_v28  ;;  %1071 = vmatprep.mubr.bf16.mxu1 %v1136_v29 }
  0x54   : > { %1040 = vmatmul.mubr.bf16.gmra.mxu0 %v1137_v30  ;;  %1072 = vmatmul.mubr.bf16.gmra.mxu1 %v1138_v31 }
  0x55   : > { %1043 = vmatprep.mubr.bf16.mxu0 %v1139_v32  ;;  %1075 = vmatprep.mubr.bf16.mxu1 %v1140_v33 }
  0x5c   : > { %1044 = vmatmul.mubr.bf16.gmra.mxu0 %v1141_v34  ;;  %1076 = vmatmul.mubr.bf16.gmra.mxu1 %v1142_v35 }
  0x5d   : > { %1047 = vmatprep.mubr.bf16.mxu0 %v1143_v36  ;;  %1079 = vmatprep.mubr.bf16.mxu1 %v1144_v37 }
  0x64   : > { %1048 = vmatmul.mubr.bf16.gmra.mxu0 %v1145_v38  ;;  %1080 = vmatmul.mubr.bf16.gmra.mxu1 %v1146_v39 }
  0xec   : > { %v1021_v41 = vpop.f32.mrf.mxu0  ;;  %v1053_v42 = vpop.f32.mrf.mxu1 }
  0xed   : > { %v545_v43 = vadd.f32 %v1021_v41, %v1251_v40  ;;  %v673_v44 = vadd.f32 %v1053_v42, %v1251_v40 }
  0xee   : > { %v536_v45 = vpop.f32.mrf.mxu0  ;;  %v664_v46 = vpop.f32.mrf.mxu1 }
  0xef   : > { %793 = vst [vmem:[%s1256_s14 + $0x10] sm:$0xff] %v545_v43  ;;  %825 = vst [vmem:[%s1256_s14 + $0x110] sm:$0xff] %v673_v44  ;;  %v537_v47 = vadd.f32 %v1251_v40, %v536_v45  ;;  %v665_v48 = vadd.f32 %v1251_v40, %v664_v46 }
  0xf0   : > { %v1022_v49 = vpop.f32.mrf.mxu0  ;;  %v1054_v50 = vpop.f32.mrf.mxu1 }
  0xf1   : > { %791 = vst [vmem:[%s1256_s14] sm:$0xff] %v537_v47  ;;  %823 = vst [vmem:[%s1256_s14 + $0x100] sm:$0xff] %v665_v48  ;;  %v548_v51 = vadd.f32 %v1022_v49, %v1251_v40  ;;  %v676_v52 = vadd.f32 %v1054_v50, %v1251_v40 }
  0xf2   : > { %v539_v53 = vpop.f32.mrf.mxu0  ;;  %v667_v54 = vpop.f32.mrf.mxu1 }
  0xf3   : > { %794 = vst [vmem:[%s1256_s14 + $0x18] sm:$0xff] %v548_v51  ;;  %826 = vst [vmem:[%s1256_s14 + $0x118] sm:$0xff] %v676_v52  ;;  %v540_v55 = vadd.f32 %v1251_v40, %v539_v53  ;;  %v668_v56 = vadd.f32 %v1251_v40, %v667_v54 }
  0xf4   : > { %v1025_v57 = vpop.f32.mrf.mxu0  ;;  %v1057_v58 = vpop.f32.mrf.mxu1 }
  0xf5   : > { %792 = vst [vmem:[%s1256_s14 + $0x8] sm:$0xff] %v540_v55  ;;  %824 = vst [vmem:[%s1256_s14 + $0x108] sm:$0xff] %v668_v56  ;;  %v561_v59 = vadd.f32 %v1025_v57, %v1251_v40  ;;  %v689_v60 = vadd.f32 %v1057_v58, %v1251_v40 }
  0xf6   : > { %v552_v61 = vpop.f32.mrf.mxu0  ;;  %v680_v62 = vpop.f32.mrf.mxu1 }
  0xf7   : > { %797 = vst [vmem:[%s1256_s14 + $0x30] sm:$0xff] %v561_v59  ;;  %829 = vst [vmem:[%s1256_s14 + $0x130] sm:$0xff] %v689_v60  ;;  %v553_v63 = vadd.f32 %v1251_v40, %v552_v61  ;;  %v681_v0 = vadd.f32 %v1251_v40, %v680_v62 }
  0xf8   : > { %v1026_v1 = vpop.f32.mrf.mxu0  ;;  %v1058_v2 = vpop.f32.mrf.mxu1 }
  0xf9   : > { %795 = vst [vmem:[%s1256_s14 + $0x20] sm:$0xff] %v553_v63  ;;  %827 = vst [vmem:[%s1256_s14 + $0x120] sm:$0xff] %v681_v0  ;;  %v564_v3 = vadd.f32 %v1026_v1, %v1251_v40  ;;  %v692_v4 = vadd.f32 %v1058_v2, %v1251_v40 }
  0xfa   : > { %v555_v5 = vpop.f32.mrf.mxu0  ;;  %v683_v6 = vpop.f32.mrf.mxu1 }
  0xfb   : > { %798 = vst [vmem:[%s1256_s14 + $0x38] sm:$0xff] %v564_v3  ;;  %830 = vst [vmem:[%s1256_s14 + $0x138] sm:$0xff] %v692_v4  ;;  %v556_v7 = vadd.f32 %v1251_v40, %v555_v5  ;;  %v684_v8 = vadd.f32 %v1251_v40, %v683_v6 }
  0xfc   : > { %v1029_v9 = vpop.f32.mrf.mxu0  ;;  %v1061_v10 = vpop.f32.mrf.mxu1 }
  0xfd   : > { %796 = vst [vmem:[%s1256_s14 + $0x28] sm:$0xff] %v556_v7  ;;  %828 = vst [vmem:[%s1256_s14 + $0x128] sm:$0xff] %v684_v8  ;;  %v577_v11 = vadd.f32 %v1029_v9, %v1251_v40  ;;  %v705_v12 = vadd.f32 %v1061_v10, %v1251_v40 }
  0xfe   : > { %v568_v13 = vpop.f32.mrf.mxu0  ;;  %v696_v14 = vpop.f32.mrf.mxu1 }
  0xff   : > { %801 = vst [vmem:[%s1256_s14 + $0x50] sm:$0xff] %v577_v11  ;;  %833 = vst [vmem:[%s1256_s14 + $0x150] sm:$0xff] %v705_v12  ;;  %v569_v15 = vadd.f32 %v1251_v40, %v568_v13  ;;  %v697_v16 = vadd.f32 %v1251_v40, %v696_v14 }
 0x100   : > { %v1030_v17 = vpop.f32.mrf.mxu0  ;;  %v1062_v18 = vpop.f32.mrf.mxu1 }
 0x101   : > { %799 = vst [vmem:[%s1256_s14 + $0x40] sm:$0xff] %v569_v15  ;;  %831 = vst [vmem:[%s1256_s14 + $0x140] sm:$0xff] %v697_v16  ;;  %v580_v19 = vadd.f32 %v1030_v17, %v1251_v40  ;;  %v708_v20 = vadd.f32 %v1062_v18, %v1251_v40 }
 0x102   : > { %v571_v21 = vpop.f32.mrf.mxu0  ;;  %v699_v22 = vpop.f32.mrf.mxu1 }
 0x103   : > { %802 = vst [vmem:[%s1256_s14 + $0x58] sm:$0xff] %v580_v19  ;;  %834 = vst [vmem:[%s1256_s14 + $0x158] sm:$0xff] %v708_v20  ;;  %v572_v23 = vadd.f32 %v1251_v40, %v571_v21  ;;  %v700_v24 = vadd.f32 %v1251_v40, %v699_v22 }
 0x104   : > { %v1033_v25 = vpop.f32.mrf.mxu0  ;;  %v1065_v26 = vpop.f32.mrf.mxu1 }
 0x105   : > { %800 = vst [vmem:[%s1256_s14 + $0x48] sm:$0xff] %v572_v23  ;;  %832 = vst [vmem:[%s1256_s14 + $0x148] sm:$0xff] %v700_v24  ;;  %v593_v27 = vadd.f32 %v1033_v25, %v1251_v40  ;;  %v721_v28 = vadd.f32 %v1065_v26, %v1251_v40 }
 0x106   : > { %v584_v29 = vpop.f32.mrf.mxu0  ;;  %v712_v30 = vpop.f32.mrf.mxu1 }
 0x107   : > { %805 = vst [vmem:[%s1256_s14 + $0x70] sm:$0xff] %v593_v27  ;;  %837 = vst [vmem:[%s1256_s14 + $0x170] sm:$0xff] %v721_v28  ;;  %v585_v31 = vadd.f32 %v1251_v40, %v584_v29  ;;  %v713_v32 = vadd.f32 %v1251_v40, %v712_v30 }
 0x108   : > { %v1034_v33 = vpop.f32.mrf.mxu0  ;;  %v1066_v34 = vpop.f32.mrf.mxu1 }
 0x109   : > { %803 = vst [vmem:[%s1256_s14 + $0x60] sm:$0xff] %v585_v31  ;;  %835 = vst [vmem:[%s1256_s14 + $0x160] sm:$0xff] %v713_v32  ;;  %v596_v35 = vadd.f32 %v1034_v33, %v1251_v40  ;;  %v724_v36 = vadd.f32 %v1066_v34, %v1251_v40 }
 0x10a   : > { %v587_v37 = vpop.f32.mrf.mxu0  ;;  %v715_v38 = vpop.f32.mrf.mxu1 }
 0x10b   : > { %806 = vst [vmem:[%s1256_s14 + $0x78] sm:$0xff] %v596_v35  ;;  %838 = vst [vmem:[%s1256_s14 + $0x178] sm:$0xff] %v724_v36  ;;  %v588_v39 = vadd.f32 %v1251_v40, %v587_v37  ;;  %v716_v41 = vadd.f32 %v1251_v40, %v715_v38 }
 0x10c   : > { %v1037_v42 = vpop.f32.mrf.mxu0  ;;  %v1069_v43 = vpop.f32.mrf.mxu1 }
 0x10d   : > { %804 = vst [vmem:[%s1256_s14 + $0x68] sm:$0xff] %v588_v39  ;;  %836 = vst [vmem:[%s1256_s14 + $0x168] sm:$0xff] %v716_v41  ;;  %v609_v44 = vadd.f32 %v1037_v42, %v1251_v40  ;;  %v737_v45 = vadd.f32 %v1069_v43, %v1251_v40 }
 0x10e   : > { %v600_v46 = vpop.f32.mrf.mxu0  ;;  %v728_v47 = vpop.f32.mrf.mxu1 }
 0x10f   : > { %809 = vst [vmem:[%s1256_s14 + $0x90] sm:$0xff] %v609_v44  ;;  %841 = vst [vmem:[%s1256_s14 + $0x190] sm:$0xff] %v737_v45  ;;  %v601_v48 = vadd.f32 %v1251_v40, %v600_v46  ;;  %v729_v49 = vadd.f32 %v1251_v40, %v728_v47 }
 0x110   : > { %v1038_v50 = vpop.f32.mrf.mxu0  ;;  %v1070_v51 = vpop.f32.mrf.mxu1 }
 0x111   : > { %807 = vst [vmem:[%s1256_s14 + $0x80] sm:$0xff] %v601_v48  ;;  %839 = vst [vmem:[%s1256_s14 + $0x180] sm:$0xff] %v729_v49  ;;  %v612_v52 = vadd.f32 %v1038_v50, %v1251_v40  ;;  %v740_v53 = vadd.f32 %v1070_v51, %v1251_v40 }
 0x112   : > { %v603_v54 = vpop.f32.mrf.mxu0  ;;  %v731_v55 = vpop.f32.mrf.mxu1 }
 0x113   : > { %810 = vst [vmem:[%s1256_s14 + $0x98] sm:$0xff] %v612_v52  ;;  %842 = vst [vmem:[%s1256_s14 + $0x198] sm:$0xff] %v740_v53  ;;  %v604_v56 = vadd.f32 %v1251_v40, %v603_v54  ;;  %v732_v57 = vadd.f32 %v1251_v40, %v731_v55 }
 0x114   : > { %v1041_v58 = vpop.f32.mrf.mxu0  ;;  %v1073_v59 = vpop.f32.mrf.mxu1 }
 0x115   : > { %808 = vst [vmem:[%s1256_s14 + $0x88] sm:$0xff] %v604_v56  ;;  %840 = vst [vmem:[%s1256_s14 + $0x188] sm:$0xff] %v732_v57  ;;  %v625_v60 = vadd.f32 %v1041_v58, %v1251_v40  ;;  %v753_v61 = vadd.f32 %v1073_v59, %v1251_v40 }
 0x116   : > { %v616_v62 = vpop.f32.mrf.mxu0  ;;  %v744_v63 = vpop.f32.mrf.mxu1 }
 0x117   : > { %813 = vst [vmem:[%s1256_s14 + $0xb0] sm:$0xff] %v625_v60  ;;  %845 = vst [vmem:[%s1256_s14 + $0x1b0] sm:$0xff] %v753_v61  ;;  %v617_v0 = vadd.f32 %v1251_v40, %v616_v62  ;;  %v745_v1 = vadd.f32 %v1251_v40, %v744_v63 }
 0x118   : > { %v1042_v2 = vpop.f32.mrf.mxu0  ;;  %v1074_v3 = vpop.f32.mrf.mxu1 }
 0x119   : > { %811 = vst [vmem:[%s1256_s14 + $0xa0] sm:$0xff] %v617_v0  ;;  %843 = vst [vmem:[%s1256_s14 + $0x1a0] sm:$0xff] %v745_v1  ;;  %v628_v4 = vadd.f32 %v1042_v2, %v1251_v40  ;;  %v756_v5 = vadd.f32 %v1074_v3, %v1251_v40 }
 0x11a   : > { %v619_v6 = vpop.f32.mrf.mxu0  ;;  %v747_v7 = vpop.f32.mrf.mxu1 }
 0x11b   : > { %814 = vst [vmem:[%s1256_s14 + $0xb8] sm:$0xff] %v628_v4  ;;  %846 = vst [vmem:[%s1256_s14 + $0x1b8] sm:$0xff] %v756_v5  ;;  %v620_v8 = vadd.f32 %v1251_v40, %v619_v6  ;;  %v748_v9 = vadd.f32 %v1251_v40, %v747_v7 }
 0x11c   : > { %v1045_v10 = vpop.f32.mrf.mxu0  ;;  %v1077_v11 = vpop.f32.mrf.mxu1 }
 0x11d   : > { %812 = vst [vmem:[%s1256_s14 + $0xa8] sm:$0xff] %v620_v8  ;;  %844 = vst [vmem:[%s1256_s14 + $0x1a8] sm:$0xff] %v748_v9  ;;  %v641_v12 = vadd.f32 %v1045_v10, %v1251_v40  ;;  %v769_v13 = vadd.f32 %v1077_v11, %v1251_v40 }
 0x11e   : > { %v632_v14 = vpop.f32.mrf.mxu0  ;;  %v760_v15 = vpop.f32.mrf.mxu1 }
 0x11f   : > { %817 = vst [vmem:[%s1256_s14 + $0xd0] sm:$0xff] %v641_v12  ;;  %849 = vst [vmem:[%s1256_s14 + $0x1d0] sm:$0xff] %v769_v13  ;;  %v633_v16 = vadd.f32 %v1251_v40, %v632_v14  ;;  %v761_v17 = vadd.f32 %v1251_v40, %v760_v15 }
 0x120   : > { %v1046_v18 = vpop.f32.mrf.mxu0  ;;  %v1078_v19 = vpop.f32.mrf.mxu1 }
 0x121   : > { %815 = vst [vmem:[%s1256_s14 + $0xc0] sm:$0xff] %v633_v16  ;;  %847 = vst [vmem:[%s1256_s14 + $0x1c0] sm:$0xff] %v761_v17  ;;  %v644_v20 = vadd.f32 %v1046_v18, %v1251_v40  ;;  %v772_v21 = vadd.f32 %v1078_v19, %v1251_v40 }
 0x122   : > { %v635_v22 = vpop.f32.mrf.mxu0  ;;  %v763_v23 = vpop.f32.mrf.mxu1 }
 0x123   : > { %818 = vst [vmem:[%s1256_s14 + $0xd8] sm:$0xff] %v644_v20  ;;  %850 = vst [vmem:[%s1256_s14 + $0x1d8] sm:$0xff] %v772_v21  ;;  %v636_v24 = vadd.f32 %v1251_v40, %v635_v22  ;;  %v764_v25 = vadd.f32 %v1251_v40, %v763_v23 }
 0x124   : > { %v1049_v26 = vpop.f32.mrf.mxu0  ;;  %v1081_v27 = vpop.f32.mrf.mxu1 }
 0x125   : > { %816 = vst [vmem:[%s1256_s14 + $0xc8] sm:$0xff] %v636_v24  ;;  %848 = vst [vmem:[%s1256_s14 + $0x1c8] sm:$0xff] %v764_v25  ;;  %v657_v28 = vadd.f32 %v1049_v26, %v1251_v40  ;;  %v785_v29 = vadd.f32 %v1081_v27, %v1251_v40 }
 0x126   : > { %v648_v30 = vpop.f32.mrf.mxu0  ;;  %v776_v31 = vpop.f32.mrf.mxu1 }
 0x127   : > { %821 = vst [vmem:[%s1256_s14 + $0xf0] sm:$0xff] %v657_v28  ;;  %853 = vst [vmem:[%s1256_s14 + $0x1f0] sm:$0xff] %v785_v29  ;;  %v649_v32 = vadd.f32 %v1251_v40, %v648_v30  ;;  %v777_v33 = vadd.f32 %v1251_v40, %v776_v31 }
 0x128   : > { %v1050_v34 = vpop.f32.mrf.mxu0  ;;  %v1082_v35 = vpop.f32.mrf.mxu1 }
 0x129   : > { %819 = vst [vmem:[%s1256_s14 + $0xe0] sm:$0xff] %v649_v32  ;;  %851 = vst [vmem:[%s1256_s14 + $0x1e0] sm:$0xff] %v777_v33  ;;  %v660_v36 = vadd.f32 %v1050_v34, %v1251_v40  ;;  %v788_v37 = vadd.f32 %v1082_v35, %v1251_v40 }
 0x12a   : > { %v651_v38 = vpop.f32.mrf.mxu0  ;;  %v779_v39 = vpop.f32.mrf.mxu1 }
 0x12b   : > { %822 = vst [vmem:[%s1256_s14 + $0xf8] sm:$0xff] %v660_v36  ;;  %854 = vst [vmem:[%s1256_s14 + $0x1f8] sm:$0xff] %v788_v37  ;;  %v652_v41 = vadd.f32 %v1251_v40, %v651_v38  ;;  %v780_v42 = vadd.f32 %v1251_v40, %v779_v39 }
 0x12d   : > { %820 = vst [vmem:[%s1256_s14 + $0xe8] sm:$0xff] %v652_v41  ;;  %852 = vst [vmem:[%s1256_s14 + $0x1e8] sm:$0xff] %v780_v42 }
 0x12e PF: > { %s13_s12 = sadd.s32 1, %s1153_s12  }
 0x12f   : > { %p10_p4 = scmp.ge.s32.totalorder %s13_s12, 5  }
 0x131   :  { %12 = sbr.rel (!%p10_p4) target bundleno = 1 (0x1), region = 62 }

// kernel: custom_model_forward.8
= control target key start
LH: loop header
LB: loop body
LE: loop exit
PB: predicated region body
PF: predicated region fallthrough
CT: control target
= control target key end

     0   :  { %s142_s0 = inlined_call_operand.vmem [shape: f32[32,128], index: 0, kind: input, shape index: {}]   ;;  %s143_s1 = inlined_call_operand.vmem [shape: f32[32,128], index: 1, kind: input, shape index: {}]   ;;  %s144_s2 = inlined_call_operand.vmem [shape: f32[32,128], index: 2, kind: input, shape index: {}]   ;;  %s145_s3 = inlined_call_operand.vmem [shape: f32[32,128], index: 3, kind: input, shape index: {}]   ;;  %s146_s4 = inlined_call_operand.vmem [shape: f32[32,128], index: 4, kind: output, shape index: {}]  }
   0x1   :  { %v17_v0 = vld [vmem:[%s142_s0] sm:$0xff]  ;;  %v18_v5 = vld [vmem:[%s142_s0 + $0x8] sm:$0xff]  ;;  %v19_v11 = vld [vmem:[%s142_s0 + $0x10] sm:$0xff] }
   0x2   :  { %v21_v1 = vld [vmem:[%s143_s1] sm:$0xff]  ;;  %v22_v6 = vld [vmem:[%s143_s1 + $0x8] sm:$0xff]  ;;  %v23_v13 = vld [vmem:[%s143_s1 + $0x10] sm:$0xff] }
   0x3   :  { %v29_v2 = vld [vmem:[%s144_s2] sm:$0xff]  ;;  %v25_v3 = vmax.f32 %v17_v0, %v21_v1  ;;  %v26_v8 = vmax.f32 %v18_v5, %v22_v6  ;;  %v30_v9 = vld [vmem:[%s144_s2 + $0x8] sm:$0xff]  ;;  %v31_v14 = vld [vmem:[%s144_s2 + $0x10] sm:$0xff]  ;;  %v27_v17 = vmax.f32 %v19_v11, %v23_v13 }
   0x4   :  { %v33_v4 = vld [vmem:[%s145_s3] sm:$0xff]  ;;  %v34_v10 = vld [vmem:[%s145_s3 + $0x8] sm:$0xff]  ;;  %v35_v15 = vld [vmem:[%s145_s3 + $0x10] sm:$0xff] }
   0x5   :  { %v37_v7 = vmax.f32 %v29_v2, %v33_v4  ;;  %v38_v12 = vmax.f32 %v30_v9, %v34_v10  ;;  %v39_v18 = vmax.f32 %v31_v14, %v35_v15  ;;  %v20_v19 = vld [vmem:[%s142_s0 + $0x18] sm:$0xff] }
   0x6   :  { %v24_v20 = vld [vmem:[%s143_s1 + $0x18] sm:$0xff] }
   0x7   :  { %v41_v16 = vmax.f32 %v25_v3, %v37_v7  ;;  %v32_v21 = vld [vmem:[%s144_s2 + $0x18] sm:$0xff]  ;;  %v42_v22 = vmax.f32 %v26_v8, %v38_v12  ;;  %v28_v23 = vmax.f32 %v20_v19, %v24_v20  ;;  %v43_v26 = vmax.f32 %v27_v17, %v39_v18 }
   0x8   :  { %v36_v24 = vld [vmem:[%s145_s3 + $0x18] sm:$0xff] }
   0x9   :  { %v45_v25 = vmax.f32 %v41_v16, 0.0  ;;  %v40_v27 = vmax.f32 %v32_v21, %v36_v24  ;;  %v46_v28 = vmax.f32 %v42_v22, 0.0  ;;  %v47_v29 = vmax.f32 %v43_v26, 0.0 }
   0xb   :  { %49 = vst [vmem:[%s146_s4] sm:$0xff] %v45_v25  ;;  %v44_v30 = vmax.f32 %v28_v23, %v40_v27  ;;  %50 = vst [vmem:[%s146_s4 + $0x8] sm:$0xff] %v46_v28 }
   0xc   :  { %51 = vst [vmem:[%s146_s4 + $0x10] sm:$0xff] %v47_v29 }
   0xd   :  { %v48_v31 = vmax.f32 %v44_v30, 0.0 }
   0xf   :  { %52 = vst [vmem:[%s146_s4 + $0x18] sm:$0xff] %v48_v31 }

// kernel: custom_model_forward.7
= control target key start
LH: loop header
LB: loop body
LE: loop exit
PB: predicated region body
PF: predicated region fallthrough
CT: control target
= control target key end

     0   :  { %s701_s1 = inlined_call_operand.vmem [shape: bf16[256,128], index: 1, kind: input, shape index: {}]   ;;  %s702_s0 = inlined_call_operand.vmem [shape: bf16[128,256], index: 0, kind: input, shape index: {}]   ;;  %s703_s2 = inlined_call_operand.vmem [shape: f32[1,128], index: 2, kind: input, shape index: {}]   ;;  %s704_s3 = inlined_call_operand.vmem [shape: f32[128,128], index: 3, kind: output, shape index: {}]  }
   0x1   :  { %v476_v0 = vld [vmem:[%s701_s1 + $0x78] sm:$0xff]   ;;  %v478_v2 = vld [vmem:[%s701_s1 + $0x70] sm:$0xff]   ;;  %v480_v4 = vld [vmem:[%s701_s1 + $0x68] sm:$0xff]  }
   0x2   :  { %v477_v1 = vld [vmem:[%s701_s1 + $0x38] sm:$0xff]   ;;  %396 = vmatprep.subr.bf16.mxu0 %v476_v0  ;;  %460 = vmatprep.subr.bf16.mxu1 %v476_v0  ;;  %v479_v3 = vld [vmem:[%s701_s1 + $0x30] sm:$0xff]   ;;  %v481_v5 = vld [vmem:[%s701_s1 + $0x28] sm:$0xff]  }
   0x3   :  { %397 = vmatpush3.bf16.msra.mxu0 %v477_v1  ;;  %468 = vmatpush3.bf16.msra.mxu1 %v477_v1  ;;  %v482_v6 = vld [vmem:[%s701_s1 + $0x60] sm:$0xff]   ;;  %v484_v8 = vld [vmem:[%s701_s1 + $0x58] sm:$0xff]   ;;  %v486_v10 = vld [vmem:[%s701_s1 + $0x50] sm:$0xff]  }
   0x4   :  { %398 = vmatprep.subr.bf16.mxu0 %v478_v2  ;;  %461 = vmatprep.subr.bf16.mxu1 %v478_v2  ;;  %v483_v7 = vld [vmem:[%s701_s1 + $0x20] sm:$0xff]   ;;  %v485_v9 = vld [vmem:[%s701_s1 + $0x18] sm:$0xff]   ;;  %v487_v13 = vld [vmem:[%s701_s1 + $0x10] sm:$0xff]  }
   0x5   :  { %v494_v11 = vld [vmem:[%s702_s0 + $0x4] ss:$8 sps:$4 sm:$0xff]   ;;  %v492_v18 = vld [vmem:[%s702_s0] ss:$8 sps:$4 sm:$0xff]   ;;  %v498_v20 = vld [vmem:[%s702_s0 + $0x14] ss:$8 sps:$4 sm:$0xff]  }
   0x6   :  { %v497_v12 = vld [vmem:[%s702_s0 + $0x44] ss:$8 sps:$4 sm:$0xff]   ;;  %278 = vmatprep.mubr.bf16.mxu0 %v494_v11  ;;  %v495_v19 = vld [vmem:[%s702_s0 + $0x40] ss:$8 sps:$4 sm:$0xff]   ;;  %v500_v21 = vld [vmem:[%s702_s0 + $0x54] ss:$8 sps:$4 sm:$0xff]  }
   0x7   :  { %399 = vmatpush3.bf16.msra.mxu0 %v479_v3  ;;  %469 = vmatpush3.bf16.msra.mxu1 %v479_v3  ;;  %v488_v14 = vld [vmem:[%s701_s1 + $0x48] sm:$0xff]   ;;  %v490_v16 = vld [vmem:[%s701_s1 + $0x40] sm:$0xff]   ;;  %v502_v22 = vld [vmem:[%s702_s0 + $0x10] ss:$8 sps:$4 sm:$0xff]  }
   0x8   :  { %400 = vmatprep.subr.bf16.mxu0 %v480_v4  ;;  %462 = vmatprep.subr.bf16.mxu1 %v480_v4  ;;  %v489_v15 = vld [vmem:[%s701_s1 + $0x8] sm:$0xff]   ;;  %v491_v17 = vld [vmem:[%s701_s1] sm:$0xff]   ;;  %v503_v23 = vld [vmem:[%s702_s0 + $0x50] ss:$8 sps:$4 sm:$0xff]  }
   0x9   :  { %310 = vmatprep.mubr.bf16.mxu1 %v497_v12  ;;  %v504_v24 = vld [vmem:[%s702_s0 + $0x24] ss:$8 sps:$4 sm:$0xff]   ;;  %v508_v26 = vld [vmem:[%s702_s0 + $0x20] ss:$8 sps:$4 sm:$0xff]   ;;  %v510_v28 = vld [vmem:[%s702_s0 + $0x34] ss:$8 sps:$4 sm:$0xff]  }
   0xa   :  { %v506_v25 = vld [vmem:[%s702_s0 + $0x64] ss:$8 sps:$4 sm:$0xff]   ;;  %v509_v27 = vld [vmem:[%s702_s0 + $0x60] ss:$8 sps:$4 sm:$0xff]   ;;  %v512_v29 = vld [vmem:[%s702_s0 + $0x74] ss:$8 sps:$4 sm:$0xff]  }
   0xb   :  { %401 = vmatpush3.bf16.msra.mxu0 %v481_v5  ;;  %470 = vmatpush3.bf16.msra.mxu1 %v481_v5  ;;  %v514_v30 = vld [vmem:[%s702_s0 + $0x30] ss:$8 sps:$4 sm:$0xff]   ;;  %v635_v34 = vld [vmem:[%s703_s2] ss:$0 sm:$0xff] }
   0xc   :  { %402 = vmatprep.subr.bf16.mxu0 %v482_v6  ;;  %463 = vmatprep.subr.bf16.mxu1 %v482_v6  ;;  %v515_v31 = vld [vmem:[%s702_s0 + $0x70] ss:$8 sps:$4 sm:$0xff]  }
   0xf   :  { %403 = vmatpush3.bf16.msra.mxu0 %v483_v7  ;;  %471 = vmatpush3.bf16.msra.mxu1 %v483_v7 }
  0x10   :  { %404 = vmatprep.subr.bf16.mxu0 %v484_v8  ;;  %464 = vmatprep.subr.bf16.mxu1 %v484_v8 }
  0x13   :  { %405 = vmatpush3.bf16.msra.mxu0 %v485_v9  ;;  %472 = vmatpush3.bf16.msra.mxu1 %v485_v9 }
  0x14   :  { %406 = vmatprep.subr.bf16.mxu0 %v486_v10  ;;  %465 = vmatprep.subr.bf16.mxu1 %v486_v10 }
  0x17   :  { %407 = vmatpush3.bf16.msra.mxu0 %v487_v13  ;;  %473 = vmatpush3.bf16.msra.mxu1 %v487_v13 }
  0x18   :  { %408 = vmatprep.subr.bf16.mxu0 %v488_v14  ;;  %466 = vmatprep.subr.bf16.mxu1 %v488_v14 }
  0x1b   :  { %409 = vmatpush3.bf16.msra.mxu0 %v489_v15  ;;  %474 = vmatpush3.bf16.msra.mxu1 %v489_v15 }
  0x1c   :  { %410 = vmatprep.subr.bf16.mxu0 %v490_v16  ;;  %467 = vmatprep.subr.bf16.mxu1 %v490_v16 }
  0x1f   :  { %411 = vmatpush3.bf16.msra.mxu0 %v491_v17  ;;  %475 = vmatpush3.bf16.msra.mxu1 %v491_v17 }
  0x22   :  { %279 = vmatmul.mubr.bf16.vlgmr.msra.gmra.mxu0 %v492_v18  ;;  %311 = vmatmul.mubr.bf16.vlgmr.msra.gmra.mxu1 %v495_v19 }
  0x23   :  { %286 = vmatprep.mubr.bf16.mxu0 %v498_v20  ;;  %318 = vmatprep.mubr.bf16.mxu1 %v500_v21 }
  0x2a   :  { %287 = vmatmul.mubr.bf16.gmra.mxu0 %v502_v22  ;;  %319 = vmatmul.mubr.bf16.gmra.mxu1 %v503_v23 }
  0x2b   :  { %294 = vmatprep.mubr.bf16.mxu0 %v504_v24  ;;  %326 = vmatprep.mubr.bf16.mxu1 %v506_v25 }
  0x32   :  { %295 = vmatmul.mubr.bf16.gmra.mxu0 %v508_v26  ;;  %327 = vmatmul.mubr.bf16.gmra.mxu1 %v509_v27 }
  0x33   :  { %302 = vmatprep.mubr.bf16.mxu0 %v510_v28  ;;  %334 = vmatprep.mubr.bf16.mxu1 %v512_v29 }
  0x3a   :  { %303 = vmatmul.mubr.bf16.gmra.mxu0 %v514_v30  ;;  %335 = vmatmul.mubr.bf16.gmra.mxu1 %v515_v31 }
  0xe2   :  { %v412_v32 = vpop.f32.mrf.mxu0  ;;  %v436_v33 = vpop.f32.mrf.mxu1 }
  0xe4   :  { %v413_v35 = vpop.f32.mrf.mxu0  ;;  %v437_v36 = vpop.f32.mrf.mxu1 }
  0xe5   :  { %v414_v37 = vadd.f32 %v413_v35, %v412_v32  ;;  %v438_v38 = vadd.f32 %v437_v36, %v436_v33 }
  0xe6   :  { %v415_v39 = vpop.f32.mrf.mxu0  ;;  %v439_v40 = vpop.f32.mrf.mxu1 }
  0xe7   :  { %v281_v41 = vadd.f32 %v414_v37, %v635_v34  ;;  %v313_v42 = vadd.f32 %v438_v38, %v635_v34 }
  0xe8   :  { %v416_v43 = vpop.f32.mrf.mxu0  ;;  %v440_v44 = vpop.f32.mrf.mxu1 }
  0xe9   :  { %343 = vst [vmem:[%s704_s3] sm:$0xff] %v281_v41  ;;  %351 = vst [vmem:[%s704_s3 + $0x40] sm:$0xff] %v313_v42  ;;  %v417_v45 = vadd.f32 %v416_v43, %v415_v39  ;;  %v441_v46 = vadd.f32 %v440_v44, %v439_v40 }
  0xea   :  { %v418_v47 = vpop.f32.mrf.mxu0  ;;  %v442_v48 = vpop.f32.mrf.mxu1 }
  0xeb   :  { %v284_v49 = vadd.f32 %v417_v45, %v635_v34  ;;  %v316_v50 = vadd.f32 %v441_v46, %v635_v34 }
  0xec   :  { %v419_v51 = vpop.f32.mrf.mxu0  ;;  %v443_v52 = vpop.f32.mrf.mxu1 }
  0xed   :  { %344 = vst [vmem:[%s704_s3 + $0x8] sm:$0xff] %v284_v49  ;;  %352 = vst [vmem:[%s704_s3 + $0x48] sm:$0xff] %v316_v50  ;;  %v420_v53 = vadd.f32 %v419_v51, %v418_v47  ;;  %v444_v54 = vadd.f32 %v443_v52, %v442_v48 }
  0xee   :  { %v421_v55 = vpop.f32.mrf.mxu0  ;;  %v445_v56 = vpop.f32.mrf.mxu1 }
  0xef   :  { %v289_v57 = vadd.f32 %v420_v53, %v635_v34  ;;  %v321_v58 = vadd.f32 %v444_v54, %v635_v34 }
  0xf0   :  { %v422_v59 = vpop.f32.mrf.mxu0  ;;  %v446_v60 = vpop.f32.mrf.mxu1 }
  0xf1   :  { %345 = vst [vmem:[%s704_s3 + $0x10] sm:$0xff] %v289_v57  ;;  %353 = vst [vmem:[%s704_s3 + $0x50] sm:$0xff] %v321_v58  ;;  %v423_v61 = vadd.f32 %v422_v59, %v421_v55  ;;  %v447_v62 = vadd.f32 %v446_v60, %v445_v56 }
  0xf2   :  { %v424_v63 = vpop.f32.mrf.mxu0  ;;  %v448_v0 = vpop.f32.mrf.mxu1 }
  0xf3   :  { %v292_v1 = vadd.f32 %v423_v61, %v635_v34  ;;  %v324_v2 = vadd.f32 %v447_v62, %v635_v34 }
  0xf4   :  { %v425_v3 = vpop.f32.mrf.mxu0  ;;  %v449_v4 = vpop.f32.mrf.mxu1 }
  0xf5   :  { %346 = vst [vmem:[%s704_s3 + $0x18] sm:$0xff] %v292_v1  ;;  %354 = vst [vmem:[%s704_s3 + $0x58] sm:$0xff] %v324_v2  ;;  %v426_v5 = vadd.f32 %v425_v3, %v424_v63  ;;  %v450_v6 = vadd.f32 %v449_v4, %v448_v0 }
  0xf6   :  { %v427_v7 = vpop.f32.mrf.mxu0  ;;  %v451_v8 = vpop.f32.mrf.mxu1 }
  0xf7   :  { %v297_v9 = vadd.f32 %v426_v5, %v635_v34  ;;  %v329_v10 = vadd.f32 %v450_v6, %v635_v34 }
  0xf8   :  { %v428_v11 = vpop.f32.mrf.mxu0  ;;  %v452_v12 = vpop.f32.mrf.mxu1 }
  0xf9   :  { %347 = vst [vmem:[%s704_s3 + $0x20] sm:$0xff] %v297_v9  ;;  %355 = vst [vmem:[%s704_s3 + $0x60] sm:$0xff] %v329_v10  ;;  %v429_v13 = vadd.f32 %v428_v11, %v427_v7  ;;  %v453_v14 = vadd.f32 %v452_v12, %v451_v8 }
  0xfa   :  { %v430_v15 = vpop.f32.mrf.mxu0  ;;  %v454_v16 = vpop.f32.mrf.mxu1 }
  0xfb   :  { %v300_v17 = vadd.f32 %v429_v13, %v635_v34  ;;  %v332_v18 = vadd.f32 %v453_v14, %v635_v34 }
  0xfc   :  { %v431_v19 = vpop.f32.mrf.mxu0  ;;  %v455_v20 = vpop.f32.mrf.mxu1 }
  0xfd   :  { %348 = vst [vmem:[%s704_s3 + $0x28] sm:$0xff] %v300_v17  ;;  %356 = vst [vmem:[%s704_s3 + $0x68] sm:$0xff] %v332_v18  ;;  %v432_v21 = vadd.f32 %v431_v19, %v430_v15  ;;  %v456_v22 = vadd.f32 %v455_v20, %v454_v16 }
  0xfe   :  { %v433_v23 = vpop.f32.mrf.mxu0  ;;  %v457_v24 = vpop.f32.mrf.mxu1 }
  0xff   :  { %v305_v25 = vadd.f32 %v432_v21, %v635_v34  ;;  %v337_v26 = vadd.f32 %v456_v22, %v635_v34 }
 0x100   :  { %v434_v27 = vpop.f32.mrf.mxu0  ;;  %v458_v28 = vpop.f32.mrf.mxu1 }
 0x101   :  { %349 = vst [vmem:[%s704_s3 + $0x30] sm:$0xff] %v305_v25  ;;  %357 = vst [vmem:[%s704_s3 + $0x70] sm:$0xff] %v337_v26  ;;  %v435_v29 = vadd.f32 %v434_v27, %v433_v23  ;;  %v459_v30 = vadd.f32 %v458_v28, %v457_v24 }
 0x103   :  { %v308_v31 = vadd.f32 %v435_v29, %v635_v34  ;;  %v340_v32 = vadd.f32 %v459_v30, %v635_v34 }
 0x105   :  { %350 = vst [vmem:[%s704_s3 + $0x38] sm:$0xff] %v308_v31  ;;  %358 = vst [vmem:[%s704_s3 + $0x78] sm:$0xff] %v340_v32 }

// kernel: custom_model_forward.9
= control target key start
LH: loop header
LB: loop body
LE: loop exit
PB: predicated region body
PF: predicated region fallthrough
CT: control target
= control target key end

     0   :  { %v557_v1 = vmov 0.0   ;;  %vm558_vm0 = vmmov 0   ;;  %vm200_vm1 = vcmask 523264   ;;  %v397_v47 = vlaneseq  ;;  %s707_s1 = inlined_call_operand.vmem [shape: bf16[320,128], index: 1, kind: input, shape index: {}]   ;;  %s708_s0 = inlined_call_operand.vmem [shape: bf16[8,320], index: 0, kind: input, shape index: {}]   ;;  %s709_s3 = inlined_call_operand.vmem [shape: bf16[128,128], index: 3, kind: input, shape index: {}]   ;;  %s710_s2 = inlined_call_operand.vmem [shape: f32[1,128], index: 2, kind: input, shape index: {}]   ;;  %s711_s4 = inlined_call_operand.vmem [shape: f32[1,128], index: 4, kind: input, shape index: {}]   ;;  %s712_s5 = inlined_call_operand.vmem [shape: f32[8,128], index: 5, kind: output, shape index: {}]  }
   0x1   :  { %v522_v0 = vld [vmem:[%s707_s1 + $0x78] sm:$0xff]   ;;  %488 = vmatprep.subr.bf16.mxu1 %v557_v1  ;;  %496 = vmatprep.mubr.msk.bf16.mxu1 %vm558_vm0, %v557_v1  ;;  %v524_v3 = vld [vmem:[%s707_s1 + $0x70] sm:$0xff]   ;;  %v526_v5 = vld [vmem:[%s707_s1 + $0x68] sm:$0xff]  }
   0x2   :  { %v523_v2 = vld [vmem:[%s707_s1 + $0x38] sm:$0xff]   ;;  %452 = vmatprep.subr.bf16.mxu0 %v522_v0  ;;  %v525_v4 = vld [vmem:[%s707_s1 + $0x30] sm:$0xff]   ;;  %v527_v6 = vld [vmem:[%s707_s1 + $0x28] sm:$0xff]   ;;  %v398_v48 = vand.u32 127, %v397_v47 }
   0x3   :  { %453 = vmatpush3.bf16.msra.mxu0 %v523_v2  ;;  %v528_v7 = vld [vmem:[%s707_s1 + $0x60] sm:$0xff]   ;;  %v532_v8 = vld [vmem:[%s707_s1 + $0x98] sm:$0xff]   ;;  %v535_v11 = vld [vmem:[%s707_s1 + $0x90] sm:$0xff]  }
   0x4   :  { %454 = vmatprep.subr.bf16.mxu0 %v524_v3  ;;  %v529_v9 = vld [vmem:[%s707_s1 + $0x20] sm:$0xff]   ;;  %v530_v10 = vld [vmem:[%s707_s1 + $0x58] sm:$0xff]   ;;  %489 = vmatpush3.bf16.msra.mxu1 %v532_v8  ;;  %v533_v13 = vld [vmem:[%s707_s1 + $0x50] sm:$0xff]   ;;  %vm399_vm2 = vcmp.lt.s32.totalorder %v398_v48, 10 }
   0x5   :  { %490 = vmatprep.subr.bf16.mxu1 %v557_v1  ;;  %v531_v12 = vld [vmem:[%s707_s1 + $0x18] sm:$0xff]   ;;  %v538_v14 = vld [vmem:[%s707_s1 + $0x88] sm:$0xff]   ;;  %v534_v15 = vld [vmem:[%s707_s1 + $0x10] sm:$0xff]  }
   0x6   :  { %v536_v16 = vld [vmem:[%s707_s1 + $0x48] sm:$0xff]   ;;  %v541_v17 = vld [vmem:[%s707_s1 + $0x80] sm:$0xff]   ;;  %v545_v23 = vld [vmem:[%s709_s3 + $0x38] sm:$0xff]  }
   0x7   :  { %455 = vmatpush3.bf16.msra.mxu0 %v525_v4  ;;  %v21_v18 = vld [vmem:[%s708_s0] sm:$0xff]  ;;  %v537_v19 = vld [vmem:[%s707_s1 + $0x8] sm:$0xff]   ;;  %v546_v25 = vld [vmem:[%s709_s3 + $0x30] sm:$0xff]  }
   0x8   :  { %456 = vmatprep.subr.bf16.mxu0 %v526_v5  ;;  %491 = vmatpush3.bf16.msra.mxu1 %v535_v11  ;;  %v420_v20 = vcombine.high %v21_v18, %v21_v18  ;;  %v539_v21 = vld [vmem:[%s707_s1 + $0x40] sm:$0xff]   ;;  %v544_v22 = vld [vmem:[%s708_s0 + $0x8] ss:$0 sps:$4 sm:$0xff]   ;;  %v419_v26 = vcombine.low %v21_v18, %v21_v18  ;;  %v549_v29 = vld [vmem:[%s709_s3 + $0x18] sm:$0xff]  }
   0x9   :  { %492 = vmatprep.subr.bf16.mxu1 %v557_v1  ;;  %v540_v24 = vld [vmem:[%s707_s1] sm:$0xff]   ;;  %v547_v27 = vld [vmem:[%s709_s3 + $0x28] sm:$0xff]   ;;  %v550_v30 = vld [vmem:[%s709_s3 + $0x10] sm:$0xff]  }
   0xa   :  { %236 = vmatprep.mubr.bf16.mxu0 %v420_v20  ;;  %v548_v28 = vld [vmem:[%s709_s3 + $0x20] sm:$0xff]   ;;  %v551_v31 = vld [vmem:[%s709_s3 + $0x8] sm:$0xff]  }
   0xb   :  { %457 = vmatpush3.bf16.msra.mxu0 %v527_v6  ;;  %v552_v32 = vld [vmem:[%s709_s3] sm:$0xff]  }
   0xc   :  { %458 = vmatprep.subr.bf16.mxu0 %v528_v7  ;;  %493 = vmatpush3.bf16.msra.mxu1 %v538_v14  ;;  %v418_v38 = vld [vmem:[%s710_s2] ss:$0 sm:$0xff] }
   0xd   :  { %494 = vmatprep.subr.bf16.mxu1 %v557_v1  ;;  %v443_v49 = vld [vmem:[%s711_s4] ss:$0 sm:$0xff] }
   0xf   :  { %459 = vmatpush3.bf16.msra.mxu0 %v529_v9 }
  0x10   :  { %460 = vmatprep.subr.bf16.mxu0 %v530_v10  ;;  %495 = vmatpush3.bf16.msra.mxu1 %v541_v17 }
  0x11   :  { %500 = vmatprep.subr.bf16.mxu1 %v557_v1 }
  0x13   :  { %461 = vmatpush3.bf16.msra.mxu0 %v531_v12  ;;  %497 = vmatmul.mubr.msk.bf16.vlgmr.msra.gmra.mxu1 %vm200_vm1, %v544_v22 }
  0x14   :  { %462 = vmatprep.subr.bf16.mxu0 %v533_v13  ;;  %501 = vmatpush3.bf16.msra.mxu1 %v545_v23 }
  0x15   :  { %502 = vmatprep.subr.bf16.mxu1 %v557_v1  ;;  %516 = vmatprep.mubr.msk.bf16.mxu1 %vm558_vm0, %v557_v1 }
  0x17   :  { %463 = vmatpush3.bf16.msra.mxu0 %v534_v15 }
  0x18   :  { %464 = vmatprep.subr.bf16.mxu0 %v536_v16  ;;  %503 = vmatpush3.bf16.msra.mxu1 %v546_v25 }
  0x19   :  { %504 = vmatprep.subr.bf16.mxu1 %v557_v1 }
  0x1b   :  { %465 = vmatpush3.bf16.msra.mxu0 %v537_v19 }
  0x1c   :  { %466 = vmatprep.subr.bf16.mxu0 %v539_v21  ;;  %505 = vmatpush3.bf16.msra.mxu1 %v547_v27 }
  0x1d   :  { %506 = vmatprep.subr.bf16.mxu1 %v557_v1 }
  0x1f   :  { %467 = vmatpush3.bf16.msra.mxu0 %v540_v24 }
  0x20   :  { %507 = vmatpush3.bf16.msra.mxu1 %v548_v28 }
  0x21   :  { %508 = vmatprep.subr.bf16.mxu1 %v557_v1 }
  0x22   :  { %237 = vmatmul.mubr.bf16.vlgmr.msra.gmra.mxu0 %v419_v26 }
  0x24   :  { %509 = vmatpush3.bf16.msra.mxu1 %v549_v29 }
  0x25   :  { %510 = vmatprep.subr.bf16.mxu1 %v557_v1 }
  0x28   :  { %511 = vmatpush3.bf16.msra.mxu1 %v550_v30 }
  0x29   :  { %512 = vmatprep.subr.bf16.mxu1 %v557_v1 }
  0x2c   :  { %513 = vmatpush3.bf16.msra.mxu1 %v551_v31 }
  0x2d   :  { %514 = vmatprep.subr.bf16.mxu1 %v557_v1 }
  0x30   :  { %515 = vmatpush3.bf16.msra.mxu1 %v552_v32 }
  0xd3   :  { %v278_v33 = vpop.f32.mrf.mxu1 }
  0xd5   :  { %v498_v34 = vpop.f32.mrf.mxu1 }
  0xd7   :  { %v281_v35 = vpop.f32.mrf.mxu1 }
  0xd9   :  { %v499_v36 = vpop.f32.mrf.mxu1 }
  0xe2   :  { %v468_v37 = vpop.f32.mrf.mxu0 }
  0xe4   :  { %v469_v39 = vpop.f32.mrf.mxu0 }
  0xe5   :  { %v470_v40 = vadd.f32 %v469_v39, %v468_v37 }
  0xe6   :  { %v471_v41 = vpop.f32.mrf.mxu0 }
  0xe7   :  { %v239_v42 = vadd.f32 %v470_v40, %v418_v38 }
  0xe8   :  { %v472_v43 = vpop.f32.mrf.mxu0 }
  0xe9   :  { %v279_v44 = vadd.f32 %v278_v33, %v239_v42 }
  0xeb   :  { %v284_v45 = vmax.f32 %v279_v44, 0.0 }
  0xed   :  { %v285_v46 = vpack.c.bf16 %v284_v45, %v284_v45 }
  0xef   :  { %517 = vmatmul.mubr.bf16.vlgmr.msra.gmra.mxu1 %v285_v46 }
 0x1af   :  { %v391_v50 = vpop.f32.mrf.mxu1 }
 0x1b0   :  { %v392_v51 = vadd.f32 %v443_v49, %v391_v50 }
 0x1b1   :  { %v518_v52 = vpop.f32.mrf.mxu1 }
 0x1b2   :  { %v400_v53 = vsel %vm399_vm2, %v392_v51, -inf }
 0x1b3   :  { %401 = vmax.xlane.f32.xlu0 %v400_v53  ;;  %v394_v54 = vpop.f32.mrf.mxu1 }
 0x1b5   :  { %v519_v55 = vpop.f32.mrf.mxu1 }
 0x23c   :  { %v402_v56 = vpop.xlane.xlu0 %401 }
 0x23d   :  { %v403_v57 = vsub.f32 %v400_v53, %v402_v56 }
 0x23f   :  { %v404_v58 = vmul.f32 1.442695, %v403_v57 }
 0x241   :  { %553 = vpow2.f32 %v404_v58 }
 0x24e   :  { %v554_v59 = vpop.eup %553 }
 0x24f   :  { %v406_v60 = vsel %vm399_vm2, %v554_v59, 0.0 }
 0x250   :  { %407 = vadd.xlane.f32.xlu0 %v406_v60 }
 0x2d9   :  { %v408_v61 = vpop.xlane.xlu0 %407 }
 0x2da   :  { %555 = vlog2.f32 %v408_v61 }
 0x2e7   :  { %v556_v62 = vpop.eup %555 }
 0x2e8   :  { %v410_v63 = vmul.f32 0.6931472, %v556_v62 }
 0x2ea   :  { %v411_v0 = vsub.f32 %v403_v57, %v410_v63 }
 0x2ec   :  { %v412_v1 = vsel %vm399_vm2, %v411_v0, 0.0 }
 0x2ed   :  { %413 = vst [vmem:[%s712_s5] sm:$0xff] %v412_v1 }

</bundles_post_ra>
